<compile_context>
chip_gen: v5e
topology: v5e:2x2
jax: 0.10.0
libtpu: 0.0.40
codegen_flags: <defaults>
</compile_context>

<pallas_src>
import functools

import jax
import jax.numpy as jnp
from jax import lax
from jax.experimental import pallas as pl
from jax.experimental.pallas import tpu as pltpu

NEWTON_MAX_IT = 100   # drrpw_newton_util.max_it
NEWTON_TOL = 1e-3     # drrpw_newton_util.tol
LANE_TILE = 128       # windows per grid step, packed on the lane axis


def _drrpw_kernel(delta_ref, phi0_ref, y_ref, z_ref, *, n_obs, n_y, b_tile):
    f32 = jnp.float32
    B = b_tile

    delta = delta_ref[0].astype(f32)
    k = 1.0 + delta                                              # as in drrpw_custom
    two_d = 2.0 * delta
    two_d2 = 2.0 * delta * delta

    # ---- hoisted constants (full lane width, built once, loop-invariant) ----
    eye_full = (lax.broadcasted_iota(jnp.int32, (n_y, n_y, B), 0)
                == lax.broadcasted_iota(jnp.int32, (n_y, n_y, B), 1)).astype(f32)

    def to_col(row):
        # (1, n_y, B) -> (n_y, 1, B); only needed for the Hessian outer products
        return jnp.concatenate([row[:, j:j + 1, :] for j in range(n_y)], axis=0)

    # ---- batched covariance Q = np.cov(Y, rowvar=False), ddof=1 (lanes = batch) ----
    Y = y_ref[...].astype(f32)                                   # (n_obs, n_y, B)
    Yc = Y - jnp.mean(Y, axis=0, keepdims=True)                  # (n_obs, n_y, B)
    q_rows = []
    for i in range(n_y):
        q_rows.append(jnp.sum(Yc * Yc[:, i:i + 1, :], axis=0, keepdims=True))
    Q = jnp.concatenate(q_rows, axis=0) * (1.0 / (n_obs - 1))    # (n_y, n_y, B)

    # Sigma = L @ L.T with L = nearestPD(Q) == Q  -> Sigma = Q @ Q.T (Q symmetric)
    Sigma = Q[:, 0:1, :] * Q[0:1, :, :]
    for l in range(1, n_y):
        Sigma = Sigma + Q[:, l:l + 1, :] * Q[l:l + 1, :, :]      # (n_y, n_y, B)

    phi_init = phi0_ref[...].astype(f32) * jnp.ones((1, 1, B), f32)   # (1, n_y, B)
    act_init = jnp.ones((1, 1, B), f32)                               # all lanes active
    tol_sq = NEWTON_TOL * NEWTON_TOL

    def gj_solve(H, g_row):
        """Column-elimination Gauss-Jordan: returns (H^{-1} g)^T as (1, n_y, B).

        Right-multiplies (A, r) by C_i = I - e_i @ srow_i until A -> I, so the
        transformed r = g^T @ H^{-1} = (H^{-1} g)^T for symmetric H. The RHS
        stays a single full-width row vreg; the one-hot in srow removes the
        pivot-row restore selects.
        """
        A = H
        r = g_row
        for i in range(n_y):
            arow = A[i:i + 1, :, :]                              # (1,n,B) pivot row
            inv_p = pl.reciprocal(arow[:, i:i + 1, :], approx=True)   # EUP slot
            srow = (arow - eye_full[i:i + 1, :, :]) * inv_p      # (1,n,B)
            r = r - r[:, i:i + 1, :] * srow                      # full-vreg RHS update
            A = A - A[:, i:i + 1, :] * srow                      # rank-1 column elimination
        return r                                                 # (1,n,B) == (H^{-1} g)^T

    def newton_body(carry):
        it, phi, act = carry
        active = act > 0.5                                       # (1,1,B) bool

        inv_phi = pl.reciprocal(phi, approx=False)               # barrier term kept exact
        # sigma_phi (row form): sp[j] = sum_i phi[i] * Sigma[i,j]  (Sigma symmetric)
        sp = phi[:, 0:1, :] * Sigma[0:1, :, :]
        for i in range(1, n_y):
            sp = sp + phi[:, i:i + 1, :] * Sigma[i:i + 1, :, :]  # (1,n,B)

        risk = jnp.sum(sp * phi, axis=1, keepdims=True)          # (1,1,B) phi^T Sigma phi
        nrm_sq = jnp.sum(phi * phi, axis=1, keepdims=True)       # (1,1,B)
        inv_nrm = lax.rsqrt(nrm_sq)
        nrm = nrm_sq * inv_nrm
        inv_sr = lax.rsqrt(risk)
        sr = risk * inv_sr
        inv_risk = inv_sr * inv_sr

        # gradient (folded per-lane scalar coefficients, row layout)
        a_sp = 2.0 + two_d * (nrm * inv_risk)                    # (1,1,B)
        a_phi = two_d * (risk * inv_nrm) + two_d2                # (1,1,B)
        g = a_sp * sp + a_phi * phi - k * inv_phi                # (1,n,B)
        gns = jnp.sum(g * g, axis=1, keepdims=True)              # (1,1,B) ||g||^2

        # Hessian: H = coefS*Sigma + phi u^T + sp v^T + eye * diag_row  (symmetric)
        c1 = inv_nrm * inv_sr                                    # 1/(||phi|| sqrt(risk))
        s1 = two_d * c1
        s2 = two_d * (nrm * inv_risk * inv_sr)                   # 2d * ||phi|| / risk^1.5
        s5 = two_d * (sr * inv_nrm * inv_nrm * inv_nrm)          # 2d * sqrt(risk)/||phi||^3
        coefS = 2.0 + two_d * (nrm * inv_sr)                     # 2 + 2d * ||phi||/sqrt(risk)
        u_row = s1 * sp - s5 * phi                               # (1,n,B)
        v_row = s1 * phi - s2 * sp                               # (1,n,B)
        diag_row = k * (inv_phi * inv_phi) + (two_d * (sr * inv_nrm) + two_d2)  # (1,n,B)
        H = (coefS * Sigma
             + to_col(phi) * u_row + to_col(sp) * v_row
             + eye_full * diag_row)                              # (n,n,B)

        dphi = gj_solve(H, g)                                    # (1,n,B)
        phi_new = jnp.where(active, phi - dphi, phi)

        nan_flag = jnp.max(jnp.where(jnp.isnan(phi_new), 1.0, 0.0),
                           axis=1, keepdims=True)                # (1,1,B)
        act_new = jnp.where(active & (gns > tol_sq) & (nan_flag < 0.5), 1.0, 0.0)
        return it + 1, phi_new, act_new

    def newton_cond(carry):
        it, _, act = carry
        return (it < NEWTON_MAX_IT) & (jnp.max(act) > 0.0)

    _, phi, _ = lax.while_loop(newton_cond, newton_body,
                               (jnp.int32(0), phi_init, act_init))

    # z_stars = z_stars / z_stars.sum(dim=1, keepdim=True)
    inv_sum = pl.reciprocal(jnp.sum(phi, axis=1, keepdims=True), approx=False)
    z_ref[...] = (phi * inv_sum).astype(z_ref.dtype)             # lane-dense store


def drrpw_forward(delta, phi0, Y, *, b_tile=LANE_TILE):
    """Pallas implementation of drrpw_net.forward(None, Y, batching=True)."""
    batch, n_obs, n_y = Y.shape
    steps = -(-batch // b_tile)
    # NOTE: for batch >= 2*b_tile on v7x, rounding `steps` up to an even count
    # balances the two TensorCores; left as-is to avoid waste on single-TC chips.
    pb = steps * b_tile
    # wrap-pad with real windows (tile + slice, no gather) so padded lanes converge
    reps = -(-pb // batch)
    Yw = jnp.tile(Y.astype(jnp.float32), (reps, 1, 1))[:pb]
    Yl = jnp.transpose(Yw, (1, 2, 0))                             # (n_obs, n_y, pb)
    phi0_l = phi0.astype(jnp.float32).reshape(1, n_y, 1)          # row layout

    kernel = functools.partial(_drrpw_kernel, n_obs=n_obs, n_y=n_y, b_tile=b_tile)
    z = pl.pallas_call(
        kernel,
        out_shape=jax.ShapeDtypeStruct((1, n_y, pb), jnp.float32),
        grid=(pb // b_tile,),
        in_specs=[
            pl.BlockSpec(memory_space=pltpu.MemorySpace.SMEM),           # delta (1,)
            pl.BlockSpec((1, n_y, 1), lambda b: (0, 0, 0)),              # prev_phi (row)
            pl.BlockSpec((n_obs, n_y, b_tile), lambda b: (0, 0, b)),     # Y windows (lanes=batch)
        ],
        out_specs=pl.BlockSpec((1, n_y, b_tile), lambda b: (0, 0, b)),
        compiler_params=pltpu.CompilerParams(
            dimension_semantics=("parallel",)),                          # megacore on v7x
    )(delta, phi0_l, Yl)
    return jnp.transpose(z[0, :, :batch], (1, 0))[:, :, None]            # (batch, n_y, 1)


def _reference(delta, phi0, Y):
    """Pure-JAX replica of the same forward pass (uses jnp.linalg.inv)."""
    n_obs, n_y = Y.shape[1], Y.shape[2]
    d = delta[0]
    k = 1.0 + d
    eye = jnp.eye(n_y, dtype=jnp.float32)

    def per_batch(Yb):
        Yc = Yb - jnp.mean(Yb, axis=0, keepdims=True)
        Q = (Yc.T @ Yc) / (n_obs - 1)
        Sigma = Q @ Q.T

        def gradient(phi):
            sp = Sigma @ phi
            risk = jnp.sum(phi * sp)
            nrm = jnp.sqrt(jnp.sum(phi * phi))
            return 2.0 * (sp + d * risk / nrm * phi + d * nrm / risk * sp
                          + d * d * phi) - k / phi

        def hessian(phi):
            nrm = jnp.sqrt(jnp.sum(phi * phi))
            sp = Sigma @ phi
            risk = jnp.sum(phi * sp)
            sr = jnp.sqrt(risk)
            B = (sp @ phi.T) / (nrm * sr) - (nrm / (risk * sr)) * (sp @ sp.T) \
                + (nrm / sr) * Sigma
            A = (phi @ sp.T) / (nrm * sr) + (sr / nrm) * eye \
                - (sr / nrm ** 3) * (phi @ phi.T)
            return (2.0 * Sigma + 2.0 * d * A + 2.0 * d * B
                    + k * jnp.diag(1.0 / (phi[:, 0] ** 2)) + 2.0 * d * d * eye)

        def body(it, carry):
            phi, g, done = carry
            done = done | (jnp.sqrt(jnp.sum(g * g)) <= NEWTON_TOL) \
                        | jnp.any(jnp.isnan(phi))
            ng = gradient(phi)
            nphi = phi - jnp.linalg.inv(hessian(phi)) @ ng
            return (jnp.where(done, phi, nphi), jnp.where(done, g, ng), done)

        phi, _, _ = lax.fori_loop(
            0, NEWTON_MAX_IT, body,
            (phi0, jnp.ones((n_y, 1), jnp.float32), jnp.zeros((), jnp.bool_)))
        return phi / jnp.sum(phi)

    return jax.vmap(per_batch)(Y.astype(jnp.float32))


if __name__ == "__main__":
    batch, n_obs, n_y = 2, 16, 8

    key = jax.random.PRNGKey(0)
    k_delta, k_y = jax.random.split(key)

    # delta ~ U(lb=0, ub=0.01), as in drrpw_net.__init__ with learnDelta=True
    delta = jax.random.uniform(k_delta, (1,), jnp.float32, minval=0.0, maxval=0.01)
    # prev_phi = ones(n_y,1)/n_y, as set in drrpw_net.net_train before the first forward
    phi0 = jnp.ones((n_y, 1), jnp.float32) / n_y
    # Y: asset-return windows (batch, n_obs, n_y)
    Y = jax.random.normal(k_y, (batch, n_obs, n_y), jnp.float32)

    z_star = drrpw_forward(delta, phi0, Y)
    z_star = jax.block_until_ready(z_star)

    z_ref = jax.block_until_ready(_reference(delta, phi0, Y))

    assert z_star.shape == (batch, n_y, 1)
    assert bool(jnp.all(jnp.isfinite(z_star)))
    assert bool(jnp.allclose(jnp.sum(z_star, axis=1), 1.0, atol=1e-5))
    assert bool(jnp.allclose(z_star, z_ref, atol=2e-3)), (z_star, z_ref)

    print("KERNEL_OK")
</pallas_src>

<mosaic_0001>
module attributes {stable_mosaic.version = 11 : i64} {
  func.func @_drrpw_kernel(%arg0: i32, %arg1: memref<1xf32, #tpu.memory_space<smem>>, %arg2: memref<1x8x1xf32, #tpu.memory_space<vmem>>, %arg3: memref<16x8x128xf32, #tpu.memory_space<vmem>>, %arg4: memref<1x8x128xf32, #tpu.memory_space<vmem>>) attributes {dimension_semantics = [#tpu.dimension_semantics<parallel>], iteration_bounds = array<i64: 1>, scalar_prefetch = 0 : i64, scratch_operands = 0 : i64, tpu.core_type = #tpu.core_type<tc>, window_params = [{transform_indices = @transform_0, window_bounds = array<i64: 1>}, {pipeline_mode = #tpu.pipeline_mode<synchronous>, transform_indices = @transform_1, window_bounds = array<i64: 1, 8, 1>}, {transform_indices = @transform_2, window_bounds = array<i64: 16, 8, 128>}, {transform_indices = @transform_3, window_bounds = array<i64: 1, 8, 128>}]} {
    %c0 = arith.constant 0 : index
    %0 = memref.load %arg1[%c0] : memref<1xf32, #tpu.memory_space<smem>>
    %cst = arith.constant 1.000000e+00 : f32
    %1 = arith.addf %cst, %0 : f32
    %cst_0 = arith.constant 2.000000e+00 : f32
    %2 = arith.mulf %cst_0, %0 : f32
    %cst_1 = arith.constant 2.000000e+00 : f32
    %3 = arith.mulf %cst_1, %0 : f32
    %4 = arith.mulf %3, %0 : f32
    %5 = tpu.iota {dimensions = array<i32: 0>} : vector<8x8x128xi32>
    %6 = tpu.iota {dimensions = array<i32: 1>} : vector<8x8x128xi32>
    %7 = arith.cmpi eq, %5, %6 : vector<8x8x128xi32>
    %8 = arith.extui %7 : vector<8x8x128xi1> to vector<8x8x128xi32>
    %9 = arith.sitofp %8 : vector<8x8x128xi32> to vector<8x8x128xf32>
    %c0_2 = arith.constant 0 : index
    %c0_3 = arith.constant 0 : index
    %c0_4 = arith.constant 0 : index
    %10 = vector.load %arg3[%c0_2, %c0_3, %c0_4] : memref<16x8x128xf32, #tpu.memory_space<vmem>>, vector<16x8x128xf32>
    %cst_5 = arith.constant dense<0.000000e+00> : vector<8x128xf32>
    %11 = vector.multi_reduction <add>, %10, %cst_5 [0] : vector<16x8x128xf32> to vector<8x128xf32>
    %12 = vector.shape_cast %11 : vector<8x128xf32> to vector<1x8x128xf32>
    %cst_6 = arith.constant 1.600000e+01 : f32
    %13 = vector.broadcast %cst_6 : f32 to vector<1x8x128xf32>
    %14 = arith.divf %12, %13 : vector<1x8x128xf32>
    %15 = vector.broadcast %14 : vector<1x8x128xf32> to vector<16x8x128xf32>
    %16 = arith.subf %10, %15 : vector<16x8x128xf32>
    %17 = vector.extract_strided_slice %16 {offsets = [0, 0, 0], sizes = [16, 1, 128], strides = [1, 1, 1]} : vector<16x8x128xf32> to vector<16x1x128xf32>
    %18 = vector.broadcast %17 : vector<16x1x128xf32> to vector<16x8x128xf32>
    %19 = arith.mulf %16, %18 : vector<16x8x128xf32>
    %cst_7 = arith.constant dense<0.000000e+00> : vector<8x128xf32>
    %20 = vector.multi_reduction <add>, %19, %cst_7 [0] : vector<16x8x128xf32> to vector<8x128xf32>
    %21 = vector.shape_cast %20 : vector<8x128xf32> to vector<1x8x128xf32>
    %22 = vector.extract_strided_slice %16 {offsets = [0, 1, 0], sizes = [16, 1, 128], strides = [1, 1, 1]} : vector<16x8x128xf32> to vector<16x1x128xf32>
    %23 = vector.broadcast %22 : vector<16x1x128xf32> to vector<16x8x128xf32>
    %24 = arith.mulf %16, %23 : vector<16x8x128xf32>
    %cst_8 = arith.constant dense<0.000000e+00> : vector<8x128xf32>
    %25 = vector.multi_reduction <add>, %24, %cst_8 [0] : vector<16x8x128xf32> to vector<8x128xf32>
    %26 = vector.shape_cast %25 : vector<8x128xf32> to vector<1x8x128xf32>
    %27 = vector.extract_strided_slice %16 {offsets = [0, 2, 0], sizes = [16, 1, 128], strides = [1, 1, 1]} : vector<16x8x128xf32> to vector<16x1x128xf32>
    %28 = vector.broadcast %27 : vector<16x1x128xf32> to vector<16x8x128xf32>
    %29 = arith.mulf %16, %28 : vector<16x8x128xf32>
    %cst_9 = arith.constant dense<0.000000e+00> : vector<8x128xf32>
    %30 = vector.multi_reduction <add>, %29, %cst_9 [0] : vector<16x8x128xf32> to vector<8x128xf32>
    %31 = vector.shape_cast %30 : vector<8x128xf32> to vector<1x8x128xf32>
    %32 = vector.extract_strided_slice %16 {offsets = [0, 3, 0], sizes = [16, 1, 128], strides = [1, 1, 1]} : vector<16x8x128xf32> to vector<16x1x128xf32>
    %33 = vector.broadcast %32 : vector<16x1x128xf32> to vector<16x8x128xf32>
    %34 = arith.mulf %16, %33 : vector<16x8x128xf32>
    %cst_10 = arith.constant dense<0.000000e+00> : vector<8x128xf32>
    %35 = vector.multi_reduction <add>, %34, %cst_10 [0] : vector<16x8x128xf32> to vector<8x128xf32>
    %36 = vector.shape_cast %35 : vector<8x128xf32> to vector<1x8x128xf32>
    %37 = vector.extract_strided_slice %16 {offsets = [0, 4, 0], sizes = [16, 1, 128], strides = [1, 1, 1]} : vector<16x8x128xf32> to vector<16x1x128xf32>
    %38 = vector.broadcast %37 : vector<16x1x128xf32> to vector<16x8x128xf32>
    %39 = arith.mulf %16, %38 : vector<16x8x128xf32>
    %cst_11 = arith.constant dense<0.000000e+00> : vector<8x128xf32>
    %40 = vector.multi_reduction <add>, %39, %cst_11 [0] : vector<16x8x128xf32> to vector<8x128xf32>
    %41 = vector.shape_cast %40 : vector<8x128xf32> to vector<1x8x128xf32>
    %42 = vector.extract_strided_slice %16 {offsets = [0, 5, 0], sizes = [16, 1, 128], strides = [1, 1, 1]} : vector<16x8x128xf32> to vector<16x1x128xf32>
    %43 = vector.broadcast %42 : vector<16x1x128xf32> to vector<16x8x128xf32>
    %44 = arith.mulf %16, %43 : vector<16x8x128xf32>
    %cst_12 = arith.constant dense<0.000000e+00> : vector<8x128xf32>
    %45 = vector.multi_reduction <add>, %44, %cst_12 [0] : vector<16x8x128xf32> to vector<8x128xf32>
    %46 = vector.shape_cast %45 : vector<8x128xf32> to vector<1x8x128xf32>
    %47 = vector.extract_strided_slice %16 {offsets = [0, 6, 0], sizes = [16, 1, 128], strides = [1, 1, 1]} : vector<16x8x128xf32> to vector<16x1x128xf32>
    %48 = vector.broadcast %47 : vector<16x1x128xf32> to vector<16x8x128xf32>
    %49 = arith.mulf %16, %48 : vector<16x8x128xf32>
    %cst_13 = arith.constant dense<0.000000e+00> : vector<8x128xf32>
    %50 = vector.multi_reduction <add>, %49, %cst_13 [0] : vector<16x8x128xf32> to vector<8x128xf32>
    %51 = vector.shape_cast %50 : vector<8x128xf32> to vector<1x8x128xf32>
    %52 = vector.extract_strided_slice %16 {offsets = [0, 7, 0], sizes = [16, 1, 128], strides = [1, 1, 1]} : vector<16x8x128xf32> to vector<16x1x128xf32>
    %53 = vector.broadcast %52 : vector<16x1x128xf32> to vector<16x8x128xf32>
    %54 = arith.mulf %16, %53 : vector<16x8x128xf32>
    %cst_14 = arith.constant dense<0.000000e+00> : vector<8x128xf32>
    %55 = vector.multi_reduction <add>, %54, %cst_14 [0] : vector<16x8x128xf32> to vector<8x128xf32>
    %56 = vector.shape_cast %55 : vector<8x128xf32> to vector<1x8x128xf32>
    %57 = tpu.concatenate %21, %26, %31, %36, %41, %46, %51, %56 in 0 : vector<1x8x128xf32>, vector<1x8x128xf32>, vector<1x8x128xf32>, vector<1x8x128xf32>, vector<1x8x128xf32>, vector<1x8x128xf32>, vector<1x8x128xf32>, vector<1x8x128xf32> -> vector<8x8x128xf32>
    %cst_15 = arith.constant 0.0666666701 : f32
    %58 = vector.broadcast %cst_15 : f32 to vector<8x8x128xf32>
    %59 = arith.mulf %57, %58 : vector<8x8x128xf32>
    %60 = vector.extract_strided_slice %59 {offsets = [0, 0, 0], sizes = [8, 1, 128], strides = [1, 1, 1]} : vector<8x8x128xf32> to vector<8x1x128xf32>
    %61 = vector.extract_strided_slice %59 {offsets = [0, 0, 0], sizes = [1, 8, 128], strides = [1, 1, 1]} : vector<8x8x128xf32> to vector<1x8x128xf32>
    %62 = vector.broadcast %60 : vector<8x1x128xf32> to vector<8x8x128xf32>
    %63 = vector.broadcast %61 : vector<1x8x128xf32> to vector<8x8x128xf32>
    %64 = arith.mulf %62, %63 : vector<8x8x128xf32>
    %65 = vector.extract_strided_slice %59 {offsets = [0, 1, 0], sizes = [8, 1, 128], strides = [1, 1, 1]} : vector<8x8x128xf32> to vector<8x1x128xf32>
    %66 = vector.extract_strided_slice %59 {offsets = [1, 0, 0], sizes = [1, 8, 128], strides = [1, 1, 1]} : vector<8x8x128xf32> to vector<1x8x128xf32>
    %67 = vector.broadcast %65 : vector<8x1x128xf32> to vector<8x8x128xf32>
    %68 = vector.broadcast %66 : vector<1x8x128xf32> to vector<8x8x128xf32>
    %69 = arith.mulf %67, %68 : vector<8x8x128xf32>
    %70 = arith.addf %64, %69 : vector<8x8x128xf32>
    %71 = vector.extract_strided_slice %59 {offsets = [0, 2, 0], sizes = [8, 1, 128], strides = [1, 1, 1]} : vector<8x8x128xf32> to vector<8x1x128xf32>
    %72 = vector.extract_strided_slice %59 {offsets = [2, 0, 0], sizes = [1, 8, 128], strides = [1, 1, 1]} : vector<8x8x128xf32> to vector<1x8x128xf32>
    %73 = vector.broadcast %71 : vector<8x1x128xf32> to vector<8x8x128xf32>
    %74 = vector.broadcast %72 : vector<1x8x128xf32> to vector<8x8x128xf32>
    %75 = arith.mulf %73, %74 : vector<8x8x128xf32>
    %76 = arith.addf %70, %75 : vector<8x8x128xf32>
    %77 = vector.extract_strided_slice %59 {offsets = [0, 3, 0], sizes = [8, 1, 128], strides = [1, 1, 1]} : vector<8x8x128xf32> to vector<8x1x128xf32>
    %78 = vector.extract_strided_slice %59 {offsets = [3, 0, 0], sizes = [1, 8, 128], strides = [1, 1, 1]} : vector<8x8x128xf32> to vector<1x8x128xf32>
    %79 = vector.broadcast %77 : vector<8x1x128xf32> to vector<8x8x128xf32>
    %80 = vector.broadcast %78 : vector<1x8x128xf32> to vector<8x8x128xf32>
    %81 = arith.mulf %79, %80 : vector<8x8x128xf32>
    %82 = arith.addf %76, %81 : vector<8x8x128xf32>
    %83 = vector.extract_strided_slice %59 {offsets = [0, 4, 0], sizes = [8, 1, 128], strides = [1, 1, 1]} : vector<8x8x128xf32> to vector<8x1x128xf32>
    %84 = vector.extract_strided_slice %59 {offsets = [4, 0, 0], sizes = [1, 8, 128], strides = [1, 1, 1]} : vector<8x8x128xf32> to vector<1x8x128xf32>
    %85 = vector.broadcast %83 : vector<8x1x128xf32> to vector<8x8x128xf32>
    %86 = vector.broadcast %84 : vector<1x8x128xf32> to vector<8x8x128xf32>
    %87 = arith.mulf %85, %86 : vector<8x8x128xf32>
    %88 = arith.addf %82, %87 : vector<8x8x128xf32>
    %89 = vector.extract_strided_slice %59 {offsets = [0, 5, 0], sizes = [8, 1, 128], strides = [1, 1, 1]} : vector<8x8x128xf32> to vector<8x1x128xf32>
    %90 = vector.extract_strided_slice %59 {offsets = [5, 0, 0], sizes = [1, 8, 128], strides = [1, 1, 1]} : vector<8x8x128xf32> to vector<1x8x128xf32>
    %91 = vector.broadcast %89 : vector<8x1x128xf32> to vector<8x8x128xf32>
    %92 = vector.broadcast %90 : vector<1x8x128xf32> to vector<8x8x128xf32>
    %93 = arith.mulf %91, %92 : vector<8x8x128xf32>
    %94 = arith.addf %88, %93 : vector<8x8x128xf32>
    %95 = vector.extract_strided_slice %59 {offsets = [0, 6, 0], sizes = [8, 1, 128], strides = [1, 1, 1]} : vector<8x8x128xf32> to vector<8x1x128xf32>
    %96 = vector.extract_strided_slice %59 {offsets = [6, 0, 0], sizes = [1, 8, 128], strides = [1, 1, 1]} : vector<8x8x128xf32> to vector<1x8x128xf32>
    %97 = vector.broadcast %95 : vector<8x1x128xf32> to vector<8x8x128xf32>
    %98 = vector.broadcast %96 : vector<1x8x128xf32> to vector<8x8x128xf32>
    %99 = arith.mulf %97, %98 : vector<8x8x128xf32>
    %100 = arith.addf %94, %99 : vector<8x8x128xf32>
    %101 = vector.extract_strided_slice %59 {offsets = [0, 7, 0], sizes = [8, 1, 128], strides = [1, 1, 1]} : vector<8x8x128xf32> to vector<8x1x128xf32>
    %102 = vector.extract_strided_slice %59 {offsets = [7, 0, 0], sizes = [1, 8, 128], strides = [1, 1, 1]} : vector<8x8x128xf32> to vector<1x8x128xf32>
    %103 = vector.broadcast %101 : vector<8x1x128xf32> to vector<8x8x128xf32>
    %104 = vector.broadcast %102 : vector<1x8x128xf32> to vector<8x8x128xf32>
    %105 = arith.mulf %103, %104 : vector<8x8x128xf32>
    %106 = arith.addf %100, %105 : vector<8x8x128xf32>
    %c0_16 = arith.constant 0 : index
    %c0_17 = arith.constant 0 : index
    %c0_18 = arith.constant 0 : index
    %107 = vector.load %arg2[%c0_16, %c0_17, %c0_18] : memref<1x8x1xf32, #tpu.memory_space<vmem>>, vector<1x8x1xf32>
    %cst_19 = arith.constant 1.000000e+00 : f32
    %108 = vector.broadcast %cst_19 : f32 to vector<1x1x128xf32>
    %109 = vector.broadcast %107 : vector<1x8x1xf32> to vector<1x8x128xf32>
    %110 = vector.broadcast %108 : vector<1x1x128xf32> to vector<1x8x128xf32>
    %111 = arith.mulf %109, %110 : vector<1x8x128xf32>
    %cst_20 = arith.constant 1.000000e+00 : f32
    %112 = vector.broadcast %cst_20 : f32 to vector<1x1x128xf32>
    %c0_i32 = arith.constant 0 : i32
    %113:3 = scf.while (%arg5 = %c0_i32, %arg6 = %111, %arg7 = %112) : (i32, vector<1x8x128xf32>, vector<1x1x128xf32>) -> (i32, vector<1x8x128xf32>, vector<1x1x128xf32>) {
      %c100_i32 = arith.constant 100 : i32
      %120 = arith.cmpi slt, %arg5, %c100_i32 : i32
      %121 = vector.shape_cast %arg7 : vector<1x1x128xf32> to vector<1x1x1x128xf32>
      %cst_25 = arith.constant dense<0xFF800000> : vector<1xf32>
      %122 = vector.multi_reduction <maximumf>, %121, %cst_25 [1, 2, 3] : vector<1x1x1x128xf32> to vector<1xf32>
      %123 = vector.shape_cast %122 : vector<1xf32> to vector<1x1x1x1xf32>
      %124 = vector.extract %123[0, 0, 0, 0] : f32 from vector<1x1x1x1xf32>
      %cst_26 = arith.constant 0.000000e+00 : f32
      %125 = arith.cmpf ogt, %124, %cst_26 : f32
      %126 = arith.andi %120, %125 : i1
      scf.condition(%126) %arg5, %arg6, %arg7 : i32, vector<1x8x128xf32>, vector<1x1x128xf32>
    } do {
    ^bb0(%arg5: i32, %arg6: vector<1x8x128xf32>, %arg7: vector<1x1x128xf32>):
      %cst_25 = arith.constant 5.000000e-01 : f32
      %120 = vector.broadcast %cst_25 : f32 to vector<1x1x128xf32>
      %121 = arith.cmpf ogt, %arg7, %120 : vector<1x1x128xf32>
      %122 = tpu.reciprocal %arg6 : vector<1x8x128xf32> -> vector<1x8x128xf32>
      %123 = vector.extract_strided_slice %arg6 {offsets = [0, 0, 0], sizes = [1, 1, 128], strides = [1, 1, 1]} : vector<1x8x128xf32> to vector<1x1x128xf32>
      %124 = vector.extract_strided_slice %106 {offsets = [0, 0, 0], sizes = [1, 8, 128], strides = [1, 1, 1]} : vector<8x8x128xf32> to vector<1x8x128xf32>
      %125 = vector.broadcast %123 : vector<1x1x128xf32> to vector<1x8x128xf32>
      %126 = arith.mulf %125, %124 : vector<1x8x128xf32>
      %127 = vector.extract_strided_slice %arg6 {offsets = [0, 1, 0], sizes = [1, 1, 128], strides = [1, 1, 1]} : vector<1x8x128xf32> to vector<1x1x128xf32>
      %128 = vector.extract_strided_slice %106 {offsets = [1, 0, 0], sizes = [1, 8, 128], strides = [1, 1, 1]} : vector<8x8x128xf32> to vector<1x8x128xf32>
      %129 = vector.broadcast %127 : vector<1x1x128xf32> to vector<1x8x128xf32>
      %130 = arith.mulf %129, %128 : vector<1x8x128xf32>
      %131 = arith.addf %126, %130 : vector<1x8x128xf32>
      %132 = vector.extract_strided_slice %arg6 {offsets = [0, 2, 0], sizes = [1, 1, 128], strides = [1, 1, 1]} : vector<1x8x128xf32> to vector<1x1x128xf32>
      %133 = vector.extract_strided_slice %106 {offsets = [2, 0, 0], sizes = [1, 8, 128], strides = [1, 1, 1]} : vector<8x8x128xf32> to vector<1x8x128xf32>
      %134 = vector.broadcast %132 : vector<1x1x128xf32> to vector<1x8x128xf32>
      %135 = arith.mulf %134, %133 : vector<1x8x128xf32>
      %136 = arith.addf %131, %135 : vector<1x8x128xf32>
      %137 = vector.extract_strided_slice %arg6 {offsets = [0, 3, 0], sizes = [1, 1, 128], strides = [1, 1, 1]} : vector<1x8x128xf32> to vector<1x1x128xf32>
      %138 = vector.extract_strided_slice %106 {offsets = [3, 0, 0], sizes = [1, 8, 128], strides = [1, 1, 1]} : vector<8x8x128xf32> to vector<1x8x128xf32>
      %139 = vector.broadcast %137 : vector<1x1x128xf32> to vector<1x8x128xf32>
      %140 = arith.mulf %139, %138 : vector<1x8x128xf32>
      %141 = arith.addf %136, %140 : vector<1x8x128xf32>
      %142 = vector.extract_strided_slice %arg6 {offsets = [0, 4, 0], sizes = [1, 1, 128], strides = [1, 1, 1]} : vector<1x8x128xf32> to vector<1x1x128xf32>
      %143 = vector.extract_strided_slice %106 {offsets = [4, 0, 0], sizes = [1, 8, 128], strides = [1, 1, 1]} : vector<8x8x128xf32> to vector<1x8x128xf32>
      %144 = vector.broadcast %142 : vector<1x1x128xf32> to vector<1x8x128xf32>
      %145 = arith.mulf %144, %143 : vector<1x8x128xf32>
      %146 = arith.addf %141, %145 : vector<1x8x128xf32>
      %147 = vector.extract_strided_slice %arg6 {offsets = [0, 5, 0], sizes = [1, 1, 128], strides = [1, 1, 1]} : vector<1x8x128xf32> to vector<1x1x128xf32>
      %148 = vector.extract_strided_slice %106 {offsets = [5, 0, 0], sizes = [1, 8, 128], strides = [1, 1, 1]} : vector<8x8x128xf32> to vector<1x8x128xf32>
      %149 = vector.broadcast %147 : vector<1x1x128xf32> to vector<1x8x128xf32>
      %150 = arith.mulf %149, %148 : vector<1x8x128xf32>
      %151 = arith.addf %146, %150 : vector<1x8x128xf32>
      %152 = vector.extract_strided_slice %arg6 {offsets = [0, 6, 0], sizes = [1, 1, 128], strides = [1, 1, 1]} : vector<1x8x128xf32> to vector<1x1x128xf32>
      %153 = vector.extract_strided_slice %106 {offsets = [6, 0, 0], sizes = [1, 8, 128], strides = [1, 1, 1]} : vector<8x8x128xf32> to vector<1x8x128xf32>
      %154 = vector.broadcast %152 : vector<1x1x128xf32> to vector<1x8x128xf32>
      %155 = arith.mulf %154, %153 : vector<1x8x128xf32>
      %156 = arith.addf %151, %155 : vector<1x8x128xf32>
      %157 = vector.extract_strided_slice %arg6 {offsets = [0, 7, 0], sizes = [1, 1, 128], strides = [1, 1, 1]} : vector<1x8x128xf32> to vector<1x1x128xf32>
      %158 = vector.extract_strided_slice %106 {offsets = [7, 0, 0], sizes = [1, 8, 128], strides = [1, 1, 1]} : vector<8x8x128xf32> to vector<1x8x128xf32>
      %159 = vector.broadcast %157 : vector<1x1x128xf32> to vector<1x8x128xf32>
      %160 = arith.mulf %159, %158 : vector<1x8x128xf32>
      %161 = arith.addf %156, %160 : vector<1x8x128xf32>
      %162 = arith.mulf %161, %arg6 : vector<1x8x128xf32>
      %cst_26 = arith.constant dense<0.000000e+00> : vector<1x128xf32>
      %163 = vector.multi_reduction <add>, %162, %cst_26 [1] : vector<1x8x128xf32> to vector<1x128xf32>
      %164 = vector.shape_cast %163 : vector<1x128xf32> to vector<1x1x128xf32>
      %165 = arith.mulf %arg6, %arg6 : vector<1x8x128xf32>
      %cst_27 = arith.constant dense<0.000000e+00> : vector<1x128xf32>
      %166 = vector.multi_reduction <add>, %165, %cst_27 [1] : vector<1x8x128xf32> to vector<1x128xf32>
      %167 = vector.shape_cast %166 : vector<1x128xf32> to vector<1x1x128xf32>
      %168 = math.rsqrt %167 : vector<1x1x128xf32>
      %169 = arith.mulf %167, %168 : vector<1x1x128xf32>
      %170 = math.rsqrt %164 : vector<1x1x128xf32>
      %171 = arith.mulf %164, %170 : vector<1x1x128xf32>
      %172 = arith.mulf %170, %170 : vector<1x1x128xf32>
      %173 = arith.mulf %169, %172 : vector<1x1x128xf32>
      %174 = vector.broadcast %2 : f32 to vector<1x1x128xf32>
      %175 = arith.mulf %174, %173 : vector<1x1x128xf32>
      %cst_28 = arith.constant 2.000000e+00 : f32
      %176 = vector.broadcast %cst_28 : f32 to vector<1x1x128xf32>
      %177 = arith.addf %176, %175 : vector<1x1x128xf32>
      %178 = arith.mulf %164, %168 : vector<1x1x128xf32>
      %179 = vector.broadcast %2 : f32 to vector<1x1x128xf32>
      %180 = arith.mulf %179, %178 : vector<1x1x128xf32>
      %181 = vector.broadcast %4 : f32 to vector<1x1x128xf32>
      %182 = arith.addf %180, %181 : vector<1x1x128xf32>
      %183 = vector.broadcast %177 : vector<1x1x128xf32> to vector<1x8x128xf32>
      %184 = arith.mulf %183, %161 : vector<1x8x128xf32>
      %185 = vector.broadcast %182 : vector<1x1x128xf32> to vector<1x8x128xf32>
      %186 = arith.mulf %185, %arg6 : vector<1x8x128xf32>
      %187 = arith.addf %184, %186 : vector<1x8x128xf32>
      %188 = vector.broadcast %1 : f32 to vector<1x8x128xf32>
      %189 = arith.mulf %188, %122 : vector<1x8x128xf32>
      %190 = arith.subf %187, %189 : vector<1x8x128xf32>
      %191 = arith.mulf %190, %190 : vector<1x8x128xf32>
      %cst_29 = arith.constant dense<0.000000e+00> : vector<1x128xf32>
      %192 = vector.multi_reduction <add>, %191, %cst_29 [1] : vector<1x8x128xf32> to vector<1x128xf32>
      %193 = vector.shape_cast %192 : vector<1x128xf32> to vector<1x1x128xf32>
      %194 = arith.mulf %168, %170 : vector<1x1x128xf32>
      %195 = vector.broadcast %2 : f32 to vector<1x1x128xf32>
      %196 = arith.mulf %195, %194 : vector<1x1x128xf32>
      %197 = arith.mulf %169, %172 : vector<1x1x128xf32>
      %198 = arith.mulf %197, %170 : vector<1x1x128xf32>
      %199 = vector.broadcast %2 : f32 to vector<1x1x128xf32>
      %200 = arith.mulf %199, %198 : vector<1x1x128xf32>
      %201 = arith.mulf %171, %168 : vector<1x1x128xf32>
      %202 = arith.mulf %201, %168 : vector<1x1x128xf32>
      %203 = arith.mulf %202, %168 : vector<1x1x128xf32>
      %204 = vector.broadcast %2 : f32 to vector<1x1x128xf32>
      %205 = arith.mulf %204, %203 : vector<1x1x128xf32>
      %206 = arith.mulf %169, %170 : vector<1x1x128xf32>
      %207 = vector.broadcast %2 : f32 to vector<1x1x128xf32>
      %208 = arith.mulf %207, %206 : vector<1x1x128xf32>
      %cst_30 = arith.constant 2.000000e+00 : f32
      %209 = vector.broadcast %cst_30 : f32 to vector<1x1x128xf32>
      %210 = arith.addf %209, %208 : vector<1x1x128xf32>
      %211 = vector.broadcast %196 : vector<1x1x128xf32> to vector<1x8x128xf32>
      %212 = arith.mulf %211, %161 : vector<1x8x128xf32>
      %213 = vector.broadcast %205 : vector<1x1x128xf32> to vector<1x8x128xf32>
      %214 = arith.mulf %213, %arg6 : vector<1x8x128xf32>
      %215 = arith.subf %212, %214 : vector<1x8x128xf32>
      %216 = vector.broadcast %196 : vector<1x1x128xf32> to vector<1x8x128xf32>
      %217 = arith.mulf %216, %arg6 : vector<1x8x128xf32>
      %218 = vector.broadcast %200 : vector<1x1x128xf32> to vector<1x8x128xf32>
      %219 = arith.mulf %218, %161 : vector<1x8x128xf32>
      %220 = arith.subf %217, %219 : vector<1x8x128xf32>
      %221 = arith.mulf %122, %122 : vector<1x8x128xf32>
      %222 = vector.broadcast %1 : f32 to vector<1x8x128xf32>
      %223 = arith.mulf %222, %221 : vector<1x8x128xf32>
      %224 = arith.mulf %171, %168 : vector<1x1x128xf32>
      %225 = vector.broadcast %2 : f32 to vector<1x1x128xf32>
      %226 = arith.mulf %225, %224 : vector<1x1x128xf32>
      %227 = vector.broadcast %4 : f32 to vector<1x1x128xf32>
      %228 = arith.addf %226, %227 : vector<1x1x128xf32>
      %229 = vector.broadcast %228 : vector<1x1x128xf32> to vector<1x8x128xf32>
      %230 = arith.addf %223, %229 : vector<1x8x128xf32>
      %231 = vector.broadcast %210 : vector<1x1x128xf32> to vector<8x8x128xf32>
      %232 = arith.mulf %231, %106 : vector<8x8x128xf32>
      %233 = vector.extract_strided_slice %arg6 {offsets = [0, 0, 0], sizes = [1, 1, 128], strides = [1, 1, 1]} : vector<1x8x128xf32> to vector<1x1x128xf32>
      %234 = vector.extract_strided_slice %arg6 {offsets = [0, 1, 0], sizes = [1, 1, 128], strides = [1, 1, 1]} : vector<1x8x128xf32> to vector<1x1x128xf32>
      %235 = vector.extract_strided_slice %arg6 {offsets = [0, 2, 0], sizes = [1, 1, 128], strides = [1, 1, 1]} : vector<1x8x128xf32> to vector<1x1x128xf32>
      %236 = vector.extract_strided_slice %arg6 {offsets = [0, 3, 0], sizes = [1, 1, 128], strides = [1, 1, 1]} : vector<1x8x128xf32> to vector<1x1x128xf32>
      %237 = vector.extract_strided_slice %arg6 {offsets = [0, 4, 0], sizes = [1, 1, 128], strides = [1, 1, 1]} : vector<1x8x128xf32> to vector<1x1x128xf32>
      %238 = vector.extract_strided_slice %arg6 {offsets = [0, 5, 0], sizes = [1, 1, 128], strides = [1, 1, 1]} : vector<1x8x128xf32> to vector<1x1x128xf32>
      %239 = vector.extract_strided_slice %arg6 {offsets = [0, 6, 0], sizes = [1, 1, 128], strides = [1, 1, 1]} : vector<1x8x128xf32> to vector<1x1x128xf32>
      %240 = vector.extract_strided_slice %arg6 {offsets = [0, 7, 0], sizes = [1, 1, 128], strides = [1, 1, 1]} : vector<1x8x128xf32> to vector<1x1x128xf32>
      %241 = tpu.concatenate %233, %234, %235, %236, %237, %238, %239, %240 in 0 : vector<1x1x128xf32>, vector<1x1x128xf32>, vector<1x1x128xf32>, vector<1x1x128xf32>, vector<1x1x128xf32>, vector<1x1x128xf32>, vector<1x1x128xf32>, vector<1x1x128xf32> -> vector<8x1x128xf32>
      %242 = vector.broadcast %241 : vector<8x1x128xf32> to vector<8x8x128xf32>
      %243 = vector.broadcast %215 : vector<1x8x128xf32> to vector<8x8x128xf32>
      %244 = arith.mulf %242, %243 : vector<8x8x128xf32>
      %245 = arith.addf %232, %244 : vector<8x8x128xf32>
      %246 = vector.extract_strided_slice %161 {offsets = [0, 0, 0], sizes = [1, 1, 128], strides = [1, 1, 1]} : vector<1x8x128xf32> to vector<1x1x128xf32>
      %247 = vector.extract_strided_slice %161 {offsets = [0, 1, 0], sizes = [1, 1, 128], strides = [1, 1, 1]} : vector<1x8x128xf32> to vector<1x1x128xf32>
      %248 = vector.extract_strided_slice %161 {offsets = [0, 2, 0], sizes = [1, 1, 128], strides = [1, 1, 1]} : vector<1x8x128xf32> to vector<1x1x128xf32>
      %249 = vector.extract_strided_slice %161 {offsets = [0, 3, 0], sizes = [1, 1, 128], strides = [1, 1, 1]} : vector<1x8x128xf32> to vector<1x1x128xf32>
      %250 = vector.extract_strided_slice %161 {offsets = [0, 4, 0], sizes = [1, 1, 128], strides = [1, 1, 1]} : vector<1x8x128xf32> to vector<1x1x128xf32>
      %251 = vector.extract_strided_slice %161 {offsets = [0, 5, 0], sizes = [1, 1, 128], strides = [1, 1, 1]} : vector<1x8x128xf32> to vector<1x1x128xf32>
      %252 = vector.extract_strided_slice %161 {offsets = [0, 6, 0], sizes = [1, 1, 128], strides = [1, 1, 1]} : vector<1x8x128xf32> to vector<1x1x128xf32>
      %253 = vector.extract_strided_slice %161 {offsets = [0, 7, 0], sizes = [1, 1, 128], strides = [1, 1, 1]} : vector<1x8x128xf32> to vector<1x1x128xf32>
      %254 = tpu.concatenate %246, %247, %248, %249, %250, %251, %252, %253 in 0 : vector<1x1x128xf32>, vector<1x1x128xf32>, vector<1x1x128xf32>, vector<1x1x128xf32>, vector<1x1x128xf32>, vector<1x1x128xf32>, vector<1x1x128xf32>, vector<1x1x128xf32> -> vector<8x1x128xf32>
      %255 = vector.broadcast %254 : vector<8x1x128xf32> to vector<8x8x128xf32>
      %256 = vector.broadcast %220 : vector<1x8x128xf32> to vector<8x8x128xf32>
      %257 = arith.mulf %255, %256 : vector<8x8x128xf32>
      %258 = arith.addf %245, %257 : vector<8x8x128xf32>
      %259 = vector.broadcast %230 : vector<1x8x128xf32> to vector<8x8x128xf32>
      %260 = arith.mulf %9, %259 : vector<8x8x128xf32>
      %261 = arith.addf %258, %260 : vector<8x8x128xf32>
      %262 = vector.extract_strided_slice %261 {offsets = [0, 0, 0], sizes = [1, 8, 128], strides = [1, 1, 1]} : vector<8x8x128xf32> to vector<1x8x128xf32>
      %263 = vector.extract_strided_slice %262 {offsets = [0, 0, 0], sizes = [1, 1, 128], strides = [1, 1, 1]} : vector<1x8x128xf32> to vector<1x1x128xf32>
      %264 = tpu.reciprocal %263 {approx = true} : vector<1x1x128xf32> -> vector<1x1x128xf32>
      %265 = vector.extract_strided_slice %9 {offsets = [0, 0, 0], sizes = [1, 8, 128], strides = [1, 1, 1]} : vector<8x8x128xf32> to vector<1x8x128xf32>
      %266 = arith.subf %262, %265 : vector<1x8x128xf32>
      %267 = vector.broadcast %264 : vector<1x1x128xf32> to vector<1x8x128xf32>
      %268 = arith.mulf %266, %267 : vector<1x8x128xf32>
      %269 = vector.extract_strided_slice %190 {offsets = [0, 0, 0], sizes = [1, 1, 128], strides = [1, 1, 1]} : vector<1x8x128xf32> to vector<1x1x128xf32>
      %270 = vector.broadcast %269 : vector<1x1x128xf32> to vector<1x8x128xf32>
      %271 = arith.mulf %270, %268 : vector<1x8x128xf32>
      %272 = arith.subf %190, %271 : vector<1x8x128xf32>
      %273 = vector.extract_strided_slice %261 {offsets = [0, 0, 0], sizes = [8, 1, 128], strides = [1, 1, 1]} : vector<8x8x128xf32> to vector<8x1x128xf32>
      %274 = vector.broadcast %273 : vector<8x1x128xf32> to vector<8x8x128xf32>
      %275 = vector.broadcast %268 : vector<1x8x128xf32> to vector<8x8x128xf32>
      %276 = arith.mulf %274, %275 : vector<8x8x128xf32>
      %277 = arith.subf %261, %276 : vector<8x8x128xf32>
      %278 = vector.extract_strided_slice %277 {offsets = [1, 0, 0], sizes = [1, 8, 128], strides = [1, 1, 1]} : vector<8x8x128xf32> to vector<1x8x128xf32>
      %279 = vector.extract_strided_slice %278 {offsets = [0, 1, 0], sizes = [1, 1, 128], strides = [1, 1, 1]} : vector<1x8x128xf32> to vector<1x1x128xf32>
      %280 = tpu.reciprocal %279 {approx = true} : vector<1x1x128xf32> -> vector<1x1x128xf32>
      %281 = vector.extract_strided_slice %9 {offsets = [1, 0, 0], sizes = [1, 8, 128], strides = [1, 1, 1]} : vector<8x8x128xf32> to vector<1x8x128xf32>
      %282 = arith.subf %278, %281 : vector<1x8x128xf32>
      %283 = vector.broadcast %280 : vector<1x1x128xf32> to vector<1x8x128xf32>
      %284 = arith.mulf %282, %283 : vector<1x8x128xf32>
      %285 = vector.extract_strided_slice %272 {offsets = [0, 1, 0], sizes = [1, 1, 128], strides = [1, 1, 1]} : vector<1x8x128xf32> to vector<1x1x128xf32>
      %286 = vector.broadcast %285 : vector<1x1x128xf32> to vector<1x8x128xf32>
      %287 = arith.mulf %286, %284 : vector<1x8x128xf32>
      %288 = arith.subf %272, %287 : vector<1x8x128xf32>
      %289 = vector.extract_strided_slice %277 {offsets = [0, 1, 0], sizes = [8, 1, 128], strides = [1, 1, 1]} : vector<8x8x128xf32> to vector<8x1x128xf32>
      %290 = vector.broadcast %289 : vector<8x1x128xf32> to vector<8x8x128xf32>
      %291 = vector.broadcast %284 : vector<1x8x128xf32> to vector<8x8x128xf32>
      %292 = arith.mulf %290, %291 : vector<8x8x128xf32>
      %293 = arith.subf %277, %292 : vector<8x8x128xf32>
      %294 = vector.extract_strided_slice %293 {offsets = [2, 0, 0], sizes = [1, 8, 128], strides = [1, 1, 1]} : vector<8x8x128xf32> to vector<1x8x128xf32>
      %295 = vector.extract_strided_slice %294 {offsets = [0, 2, 0], sizes = [1, 1, 128], strides = [1, 1, 1]} : vector<1x8x128xf32> to vector<1x1x128xf32>
      %296 = tpu.reciprocal %295 {approx = true} : vector<1x1x128xf32> -> vector<1x1x128xf32>
      %297 = vector.extract_strided_slice %9 {offsets = [2, 0, 0], sizes = [1, 8, 128], strides = [1, 1, 1]} : vector<8x8x128xf32> to vector<1x8x128xf32>
      %298 = arith.subf %294, %297 : vector<1x8x128xf32>
      %299 = vector.broadcast %296 : vector<1x1x128xf32> to vector<1x8x128xf32>
      %300 = arith.mulf %298, %299 : vector<1x8x128xf32>
      %301 = vector.extract_strided_slice %288 {offsets = [0, 2, 0], sizes = [1, 1, 128], strides = [1, 1, 1]} : vector<1x8x128xf32> to vector<1x1x128xf32>
      %302 = vector.broadcast %301 : vector<1x1x128xf32> to vector<1x8x128xf32>
      %303 = arith.mulf %302, %300 : vector<1x8x128xf32>
      %304 = arith.subf %288, %303 : vector<1x8x128xf32>
      %305 = vector.extract_strided_slice %293 {offsets = [0, 2, 0], sizes = [8, 1, 128], strides = [1, 1, 1]} : vector<8x8x128xf32> to vector<8x1x128xf32>
      %306 = vector.broadcast %305 : vector<8x1x128xf32> to vector<8x8x128xf32>
      %307 = vector.broadcast %300 : vector<1x8x128xf32> to vector<8x8x128xf32>
      %308 = arith.mulf %306, %307 : vector<8x8x128xf32>
      %309 = arith.subf %293, %308 : vector<8x8x128xf32>
      %310 = vector.extract_strided_slice %309 {offsets = [3, 0, 0], sizes = [1, 8, 128], strides = [1, 1, 1]} : vector<8x8x128xf32> to vector<1x8x128xf32>
      %311 = vector.extract_strided_slice %310 {offsets = [0, 3, 0], sizes = [1, 1, 128], strides = [1, 1, 1]} : vector<1x8x128xf32> to vector<1x1x128xf32>
      %312 = tpu.reciprocal %311 {approx = true} : vector<1x1x128xf32> -> vector<1x1x128xf32>
      %313 = vector.extract_strided_slice %9 {offsets = [3, 0, 0], sizes = [1, 8, 128], strides = [1, 1, 1]} : vector<8x8x128xf32> to vector<1x8x128xf32>
      %314 = arith.subf %310, %313 : vector<1x8x128xf32>
      %315 = vector.broadcast %312 : vector<1x1x128xf32> to vector<1x8x128xf32>
      %316 = arith.mulf %314, %315 : vector<1x8x128xf32>
      %317 = vector.extract_strided_slice %304 {offsets = [0, 3, 0], sizes = [1, 1, 128], strides = [1, 1, 1]} : vector<1x8x128xf32> to vector<1x1x128xf32>
      %318 = vector.broadcast %317 : vector<1x1x128xf32> to vector<1x8x128xf32>
      %319 = arith.mulf %318, %316 : vector<1x8x128xf32>
      %320 = arith.subf %304, %319 : vector<1x8x128xf32>
      %321 = vector.extract_strided_slice %309 {offsets = [0, 3, 0], sizes = [8, 1, 128], strides = [1, 1, 1]} : vector<8x8x128xf32> to vector<8x1x128xf32>
      %322 = vector.broadcast %321 : vector<8x1x128xf32> to vector<8x8x128xf32>
      %323 = vector.broadcast %316 : vector<1x8x128xf32> to vector<8x8x128xf32>
      %324 = arith.mulf %322, %323 : vector<8x8x128xf32>
      %325 = arith.subf %309, %324 : vector<8x8x128xf32>
      %326 = vector.extract_strided_slice %325 {offsets = [4, 0, 0], sizes = [1, 8, 128], strides = [1, 1, 1]} : vector<8x8x128xf32> to vector<1x8x128xf32>
      %327 = vector.extract_strided_slice %326 {offsets = [0, 4, 0], sizes = [1, 1, 128], strides = [1, 1, 1]} : vector<1x8x128xf32> to vector<1x1x128xf32>
      %328 = tpu.reciprocal %327 {approx = true} : vector<1x1x128xf32> -> vector<1x1x128xf32>
      %329 = vector.extract_strided_slice %9 {offsets = [4, 0, 0], sizes = [1, 8, 128], strides = [1, 1, 1]} : vector<8x8x128xf32> to vector<1x8x128xf32>
      %330 = arith.subf %326, %329 : vector<1x8x128xf32>
      %331 = vector.broadcast %328 : vector<1x1x128xf32> to vector<1x8x128xf32>
      %332 = arith.mulf %330, %331 : vector<1x8x128xf32>
      %333 = vector.extract_strided_slice %320 {offsets = [0, 4, 0], sizes = [1, 1, 128], strides = [1, 1, 1]} : vector<1x8x128xf32> to vector<1x1x128xf32>
      %334 = vector.broadcast %333 : vector<1x1x128xf32> to vector<1x8x128xf32>
      %335 = arith.mulf %334, %332 : vector<1x8x128xf32>
      %336 = arith.subf %320, %335 : vector<1x8x128xf32>
      %337 = vector.extract_strided_slice %325 {offsets = [0, 4, 0], sizes = [8, 1, 128], strides = [1, 1, 1]} : vector<8x8x128xf32> to vector<8x1x128xf32>
      %338 = vector.broadcast %337 : vector<8x1x128xf32> to vector<8x8x128xf32>
      %339 = vector.broadcast %332 : vector<1x8x128xf32> to vector<8x8x128xf32>
      %340 = arith.mulf %338, %339 : vector<8x8x128xf32>
      %341 = arith.subf %325, %340 : vector<8x8x128xf32>
      %342 = vector.extract_strided_slice %341 {offsets = [5, 0, 0], sizes = [1, 8, 128], strides = [1, 1, 1]} : vector<8x8x128xf32> to vector<1x8x128xf32>
      %343 = vector.extract_strided_slice %342 {offsets = [0, 5, 0], sizes = [1, 1, 128], strides = [1, 1, 1]} : vector<1x8x128xf32> to vector<1x1x128xf32>
      %344 = tpu.reciprocal %343 {approx = true} : vector<1x1x128xf32> -> vector<1x1x128xf32>
      %345 = vector.extract_strided_slice %9 {offsets = [5, 0, 0], sizes = [1, 8, 128], strides = [1, 1, 1]} : vector<8x8x128xf32> to vector<1x8x128xf32>
      %346 = arith.subf %342, %345 : vector<1x8x128xf32>
      %347 = vector.broadcast %344 : vector<1x1x128xf32> to vector<1x8x128xf32>
      %348 = arith.mulf %346, %347 : vector<1x8x128xf32>
      %349 = vector.extract_strided_slice %336 {offsets = [0, 5, 0], sizes = [1, 1, 128], strides = [1, 1, 1]} : vector<1x8x128xf32> to vector<1x1x128xf32>
      %350 = vector.broadcast %349 : vector<1x1x128xf32> to vector<1x8x128xf32>
      %351 = arith.mulf %350, %348 : vector<1x8x128xf32>
      %352 = arith.subf %336, %351 : vector<1x8x128xf32>
      %353 = vector.extract_strided_slice %341 {offsets = [0, 5, 0], sizes = [8, 1, 128], strides = [1, 1, 1]} : vector<8x8x128xf32> to vector<8x1x128xf32>
      %354 = vector.broadcast %353 : vector<8x1x128xf32> to vector<8x8x128xf32>
      %355 = vector.broadcast %348 : vector<1x8x128xf32> to vector<8x8x128xf32>
      %356 = arith.mulf %354, %355 : vector<8x8x128xf32>
      %357 = arith.subf %341, %356 : vector<8x8x128xf32>
      %358 = vector.extract_strided_slice %357 {offsets = [6, 0, 0], sizes = [1, 8, 128], strides = [1, 1, 1]} : vector<8x8x128xf32> to vector<1x8x128xf32>
      %359 = vector.extract_strided_slice %358 {offsets = [0, 6, 0], sizes = [1, 1, 128], strides = [1, 1, 1]} : vector<1x8x128xf32> to vector<1x1x128xf32>
      %360 = tpu.reciprocal %359 {approx = true} : vector<1x1x128xf32> -> vector<1x1x128xf32>
      %361 = vector.extract_strided_slice %9 {offsets = [6, 0, 0], sizes = [1, 8, 128], strides = [1, 1, 1]} : vector<8x8x128xf32> to vector<1x8x128xf32>
      %362 = arith.subf %358, %361 : vector<1x8x128xf32>
      %363 = vector.broadcast %360 : vector<1x1x128xf32> to vector<1x8x128xf32>
      %364 = arith.mulf %362, %363 : vector<1x8x128xf32>
      %365 = vector.extract_strided_slice %352 {offsets = [0, 6, 0], sizes = [1, 1, 128], strides = [1, 1, 1]} : vector<1x8x128xf32> to vector<1x1x128xf32>
      %366 = vector.broadcast %365 : vector<1x1x128xf32> to vector<1x8x128xf32>
      %367 = arith.mulf %366, %364 : vector<1x8x128xf32>
      %368 = arith.subf %352, %367 : vector<1x8x128xf32>
      %369 = vector.extract_strided_slice %357 {offsets = [0, 6, 0], sizes = [8, 1, 128], strides = [1, 1, 1]} : vector<8x8x128xf32> to vector<8x1x128xf32>
      %370 = vector.broadcast %369 : vector<8x1x128xf32> to vector<8x8x128xf32>
      %371 = vector.broadcast %364 : vector<1x8x128xf32> to vector<8x8x128xf32>
      %372 = arith.mulf %370, %371 : vector<8x8x128xf32>
      %373 = arith.subf %357, %372 : vector<8x8x128xf32>
      %374 = vector.extract_strided_slice %373 {offsets = [7, 0, 0], sizes = [1, 8, 128], strides = [1, 1, 1]} : vector<8x8x128xf32> to vector<1x8x128xf32>
      %375 = vector.extract_strided_slice %374 {offsets = [0, 7, 0], sizes = [1, 1, 128], strides = [1, 1, 1]} : vector<1x8x128xf32> to vector<1x1x128xf32>
      %376 = tpu.reciprocal %375 {approx = true} : vector<1x1x128xf32> -> vector<1x1x128xf32>
      %377 = vector.extract_strided_slice %9 {offsets = [7, 0, 0], sizes = [1, 8, 128], strides = [1, 1, 1]} : vector<8x8x128xf32> to vector<1x8x128xf32>
      %378 = arith.subf %374, %377 : vector<1x8x128xf32>
      %379 = vector.broadcast %376 : vector<1x1x128xf32> to vector<1x8x128xf32>
      %380 = arith.mulf %378, %379 : vector<1x8x128xf32>
      %381 = vector.extract_strided_slice %368 {offsets = [0, 7, 0], sizes = [1, 1, 128], strides = [1, 1, 1]} : vector<1x8x128xf32> to vector<1x1x128xf32>
      %382 = vector.broadcast %381 : vector<1x1x128xf32> to vector<1x8x128xf32>
      %383 = arith.mulf %382, %380 : vector<1x8x128xf32>
      %384 = arith.subf %368, %383 : vector<1x8x128xf32>
      %385 = vector.extract_strided_slice %373 {offsets = [0, 7, 0], sizes = [8, 1, 128], strides = [1, 1, 1]} : vector<8x8x128xf32> to vector<8x1x128xf32>
      %386 = vector.broadcast %385 : vector<8x1x128xf32> to vector<8x8x128xf32>
      %387 = vector.broadcast %380 : vector<1x8x128xf32> to vector<8x8x128xf32>
      %388 = arith.mulf %386, %387 : vector<8x8x128xf32>
      %389 = arith.subf %373, %388 : vector<8x8x128xf32>
      %390 = arith.subf %arg6, %384 : vector<1x8x128xf32>
      %391 = vector.shape_cast %121 : vector<1x1x128xi1> to vector<1x1x128xi1>
      %392 = vector.broadcast %391 : vector<1x1x128xi1> to vector<1x8x128xi1>
      %393 = arith.select %392, %390, %arg6 : vector<1x8x128xi1>, vector<1x8x128xf32>
      %394 = arith.cmpf one, %393, %393 : vector<1x8x128xf32>
      %cst_31 = arith.constant 1.000000e+00 : f32
      %cst_32 = arith.constant 0.000000e+00 : f32
      %395 = vector.broadcast %cst_31 : f32 to vector<1x8x128xf32>
      %396 = vector.broadcast %cst_32 : f32 to vector<1x8x128xf32>
      %397 = arith.select %394, %395, %396 : vector<1x8x128xi1>, vector<1x8x128xf32>
      %cst_33 = arith.constant dense<0xFF800000> : vector<1x128xf32>
      %398 = vector.multi_reduction <maximumf>, %397, %cst_33 [1] : vector<1x8x128xf32> to vector<1x128xf32>
      %399 = vector.shape_cast %398 : vector<1x128xf32> to vector<1x1x128xf32>
      %cst_34 = arith.constant 9.99999997E-7 : f32
      %400 = vector.broadcast %cst_34 : f32 to vector<1x1x128xf32>
      %401 = arith.cmpf ogt, %193, %400 : vector<1x1x128xf32>
      %402 = arith.andi %121, %401 : vector<1x1x128xi1>
      %cst_35 = arith.constant 5.000000e-01 : f32
      %403 = vector.broadcast %cst_35 : f32 to vector<1x1x128xf32>
      %404 = arith.cmpf olt, %399, %403 : vector<1x1x128xf32>
      %405 = arith.andi %402, %404 : vector<1x1x128xi1>
      %cst_36 = arith.constant 1.000000e+00 : f32
      %cst_37 = arith.constant 0.000000e+00 : f32
      %406 = vector.broadcast %cst_36 : f32 to vector<1x1x128xf32>
      %407 = vector.broadcast %cst_37 : f32 to vector<1x1x128xf32>
      %408 = arith.select %405, %406, %407 : vector<1x1x128xi1>, vector<1x1x128xf32>
      %c1_i32 = arith.constant 1 : i32
      %409 = arith.addi %arg5, %c1_i32 : i32
      scf.yield %409, %393, %408 : i32, vector<1x8x128xf32>, vector<1x1x128xf32>
    }
    %cst_21 = arith.constant dense<0.000000e+00> : vector<1x128xf32>
    %114 = vector.multi_reduction <add>, %113#1, %cst_21 [1] : vector<1x8x128xf32> to vector<1x128xf32>
    %115 = vector.shape_cast %114 : vector<1x128xf32> to vector<1x1x128xf32>
    %116 = tpu.reciprocal %115 : vector<1x1x128xf32> -> vector<1x1x128xf32>
    %117 = vector.broadcast %116 : vector<1x1x128xf32> to vector<1x8x128xf32>
    %118 = arith.mulf %113#1, %117 : vector<1x8x128xf32>
    %c0_22 = arith.constant 0 : index
    %c0_23 = arith.constant 0 : index
    %c0_24 = arith.constant 0 : index
    %119 = vector.load %arg4[%c0_22, %c0_23, %c0_24] : memref<1x8x128xf32, #tpu.memory_space<vmem>>, vector<1x8x128xf32>
    tpu.vector_store %arg4[%c0_22, %c0_23, %c0_24], %118 {strides = array<i32>} : memref<1x8x128xf32, #tpu.memory_space<vmem>>, vector<1x8x128xf32>,
    return
  }
  func.func @transform_0(%arg0: i32) -> i32 {
    %c0_i32 = arith.constant 0 : i32
    %c0_i32_0 = arith.constant 0 : i32
    return %c0_i32 : i32
  }
  func.func @transform_1(%arg0: i32) -> (i32, i32, i32) {
    %c0_i32 = arith.constant 0 : i32
    %c0_i32_0 = arith.constant 0 : i32
    %c0_i32_1 = arith.constant 0 : i32
    %c0_i32_2 = arith.constant 0 : i32
    return %c0_i32, %c0_i32_0, %c0_i32_1 : i32, i32, i32
  }
  func.func @transform_2(%arg0: i32) -> (i32, i32, i32) {
    %c0_i32 = arith.constant 0 : i32
    %c0_i32_0 = arith.constant 0 : i32
    %c0_i32_1 = arith.constant 0 : i32
    return %c0_i32, %c0_i32_0, %arg0 : i32, i32, i32
  }
  func.func @transform_3(%arg0: i32) -> (i32, i32, i32) {
    %c0_i32 = arith.constant 0 : i32
    %c0_i32_0 = arith.constant 0 : i32
    %c0_i32_1 = arith.constant 0 : i32
    return %c0_i32, %c0_i32_0, %arg0 : i32, i32, i32
  }
}

</mosaic_0001>

<bundles_post_ra>
// kernel: tpu_custom_call.1
= control target key start
LH: loop header
LB: loop body
LE: loop exit
PB: predicated region body
PF: predicated region fallthrough
CT: control target
= control target key end

     0   :  { %9 = vsyncpa [#allocation4], 0  ;;  %s2204_s0 = inlined_call_operand.<no memory space> [shape: f32[1], index: 0, kind: input, shape index: {}]   ;;  %s2205_s1 = inlined_call_operand.vmem [shape: f32[1,8,1], index: 1, kind: input, shape index: {}]   ;;  %s2206_s2 = inlined_call_operand.hbm [shape: f32[16,8,128], index: 2, kind: input, shape index: {}]   ;;  %s2207_s3 = inlined_call_operand.hbm [shape: f32[1,8,128], index: 3, kind: output, shape index: {}]  }
   0x1   :  { %10 = vsyncpa [#allocation5], 0  ;;  %s19_s14 = sshll.u32 %s2206_s2, 4  ;;  %s1301_s15 = smov [#allocation3]   ;;  %s20_s14 = int_to_ptr.hbm [resolvable:$true] %s19_s14 }
   0x2   :  { %s21_s16 = sshll.u32 %s1301_s15, 4  ;;  %s1302_s17 = smov 128   ;;  %s22_s16 = int_to_ptr.vmem [resolvable:$true] %s21_s16 }
   0x3   :  { %s1303_s18 = smov 8  }
   0x4   :  { %27 = dma.hbm_to_vmem [thread:$0]  %s20_s14, 2048, %s22_s16, [#allocation4], %s1302_s17, %s1302_s17, %s1303_s18  }
   0x5   :  { %1281 = dma.done.wait [#allocation4], 2048  }
   0x6   :  { %1282 = vsyncadd [#allocation4], 4294965248  ;;  %s33_s21 = sadd.f32 1.0, %s2204_s0  ;;  %s34_s24 = smul.f32 2.0, %s2204_s0  ;;  %v1304_v0 = vmov 0   ;;  %v685_v1 = vld [vmem:[%s2205_s1] sm:$0xff] }
   0x7   :  { %1190 = vset.pattern.permute.xlu0 %v1304_v0  ;;  %v62_v2 = vld [vmem:[#allocation3] sm:$0xff]  ;;  %v63_v3 = vld [vmem:[#allocation3 + $0x8] sm:$0xff]  ;;  %v64_v4 = vld [vmem:[#allocation3 + $0x10] sm:$0xff]  ;;  %v1305_v16 = vmov 16.0  }
   0x8   :  { %s1346_s28 = smul.f32 %s34_s24, %s2204_s0  ;;  %688 = vperm.xlu0 %1190, %v685_v1   ;;  %v78_v5 = vadd.f32 %v63_v3, %v62_v2  ;;  %v65_v6 = vld [vmem:[#allocation3 + $0x18] sm:$0xff]  ;;  %v66_v8 = vld [vmem:[#allocation3 + $0x20] sm:$0xff]  ;;  %v67_v10 = vld [vmem:[#allocation3 + $0x28] sm:$0xff]  ;;  %1191 = vrcp.f32 %v1305_v16 }
   0x9   :  { %v68_v12 = vld [vmem:[#allocation3 + $0x30] sm:$0xff]  ;;  %v69_v14 = vld [vmem:[#allocation3 + $0x38] sm:$0xff]  ;;  %v70_v17 = vld [vmem:[#allocation3 + $0x40] sm:$0xff] }
   0xa   :  { %v79_v7 = vadd.f32 %v78_v5, %v64_v4  ;;  %v1351_v19 = vld [vmem:[#allocation3 + $0x48] sm:$0xff]  ;;  %v1353_v21 = vld [vmem:[#allocation3 + $0x50] sm:$0xff]  ;;  %v1356_v24 = vld [vmem:[#allocation3 + $0x58] sm:$0xff] }
   0xb   :  { %v1359_v27 = vld [vmem:[#allocation3 + $0x60] sm:$0xff]  ;;  %v1362_v30 = vld [vmem:[#allocation3 + $0x68] sm:$0xff]  ;;  %v1365_v33 = vld [vmem:[#allocation3 + $0x70] sm:$0xff] }
   0xc   :  { %v80_v9 = vadd.f32 %v79_v7, %v65_v6  ;;  %v1368_v36 = vld [vmem:[#allocation3 + $0x78] sm:$0xff] }
   0xe   :  { %v81_v11 = vadd.f32 %v80_v9, %v66_v8  ;;  %v1192_v22 = vpop.eup %1191 }
   0xf   :  { %v94_v25 = vmul.f32 16.0, %v1192_v22  ;;  %vm98_vm0 = vweird.f32 %v1192_v22 }
  0x10   :  { %v82_v13 = vadd.f32 %v81_v11, %v67_v10 }
  0x11   :  { %v95_v28 = vsub.f32 1.0, %v94_v25 }
  0x12   :  { %v83_v15 = vadd.f32 %v82_v13, %v68_v12 }
  0x13   :  { %v96_v31 = vmul.f32 %v1192_v22, %v95_v28 }
  0x14   :  { %v84_v18 = vadd.f32 %v83_v15, %v69_v14 }
  0x15   :  { %v97_v34 = vadd.f32 %v1192_v22, %v96_v31 }
  0x16   :  { %v85_v20 = vadd.f32 %v84_v18, %v70_v17 }
  0x17   :  { %v99_v38 = vsel %vm98_vm0, %v1192_v22, %v97_v34 }
  0x18   :  { %v86_v23 = vadd.f32 %v85_v20, %v1351_v19 }
  0x1a   :  { %v87_v26 = vadd.f32 %v86_v23, %v1353_v21 }
  0x1c   :  { %v88_v29 = vadd.f32 %v87_v26, %v1356_v24 }
  0x1e   :  { %v89_v32 = vadd.f32 %v88_v29, %v1359_v27 }
  0x20   :  { %v90_v35 = vadd.f32 %v89_v32, %v1362_v30 }
  0x22   :  { %v91_v37 = vadd.f32 %v90_v35, %v1365_v33 }
  0x24   :  { %v92_v39 = vadd.f32 %v91_v37, %v1368_v36 }
  0x26   :  { %v1372_v40 = vmul.f32 %v99_v38, %v92_v39 }
  0x28   :  { %v1375_v41 = vsub.f32 %v62_v2, %v1372_v40  ;;  %v1378_v42 = vsub.f32 %v63_v3, %v1372_v40  ;;  %v1381_v43 = vsub.f32 %v64_v4, %v1372_v40  ;;  %v1384_v44 = vsub.f32 %v65_v6, %v1372_v40 }
  0x29   :  { %v1387_v45 = vsub.f32 %v66_v8, %v1372_v40  ;;  %v1397_v53 = vsub.f32 %v67_v10, %v1372_v40  ;;  %v1406_v60 = vsub.f32 %v68_v12, %v1372_v40  ;;  %v1415_v4 = vsub.f32 %v69_v14, %v1372_v40 }
  0x2a   :  { %v117_v46 = vperm.slane %v1375_v41, 0  ;;  %v118_v47 = vperm.slane %v1378_v42, 0  ;;  %v119_v48 = vperm.slane %v1381_v43, 0  ;;  %v120_v49 = vperm.slane %v1384_v44, 0 }
  0x2b   :  { %v164_v50 = vperm.slane %v1375_v41, 1  ;;  %v165_v51 = vperm.slane %v1378_v42, 1  ;;  %v166_v52 = vperm.slane %v1381_v43, 1  ;;  %v121_v54 = vperm.slane %v1387_v45, 0 }
  0x2c   :  { %v133_v55 = vmul.f32 %v117_v46, %v1375_v41  ;;  %v134_v56 = vmul.f32 %v118_v47, %v1378_v42  ;;  %v135_v57 = vmul.f32 %v119_v48, %v1381_v43  ;;  %v167_v58 = vperm.slane %v1384_v44, 1 }
  0x2d   :  { %v168_v59 = vperm.slane %v1387_v45, 1  ;;  %v122_v61 = vperm.slane %v1397_v53, 0  ;;  %v136_v62 = vmul.f32 %v120_v49, %v1384_v44  ;;  %v137_v0 = vmul.f32 %v121_v54, %v1387_v45 }
  0x2e   :  { %v149_v63 = vadd.f32 %v134_v56, %v133_v55  ;;  %v169_v1 = vperm.slane %v1397_v53, 1  ;;  %v180_v2 = vmul.f32 %v164_v50, %v1375_v41  ;;  %v181_v3 = vmul.f32 %v165_v51, %v1378_v42 }
  0x2f   :  { %v123_v5 = vperm.slane %v1406_v60, 0  ;;  %v182_v7 = vmul.f32 %v166_v52, %v1381_v43  ;;  %v138_v8 = vmul.f32 %v122_v61, %v1397_v53  ;;  %v170_v9 = vperm.slane %v1406_v60, 1 }
  0x30   :  { %v150_v6 = vadd.f32 %v149_v63, %v135_v57  ;;  %v183_v10 = vmul.f32 %v167_v58, %v1384_v44  ;;  %v184_v11 = vmul.f32 %v168_v59, %v1387_v45  ;;  %v1424_v12 = vsub.f32 %v70_v17, %v1372_v40 }
  0x31   :  { %v124_v13 = vperm.slane %v1415_v4, 0  ;;  %v185_v15 = vmul.f32 %v169_v1, %v1397_v53  ;;  %v139_v16 = vmul.f32 %v123_v5, %v1406_v60  ;;  %v171_v18 = vperm.slane %v1415_v4, 1 }
  0x32   :  { %v151_v14 = vadd.f32 %v150_v6, %v136_v62  ;;  %v186_v20 = vmul.f32 %v170_v9, %v1406_v60  ;;  %v196_v22 = vadd.f32 %v181_v3, %v180_v2  ;;  %v1433_v23 = vsub.f32 %v1351_v19, %v1372_v40 }
  0x33   :  { %v125_v25 = vperm.slane %v1424_v12, 0  ;;  %v211_v26 = vperm.slane %v1375_v41, 2  ;;  %v140_v28 = vmul.f32 %v124_v13, %v1415_v4  ;;  %v172_v29 = vperm.slane %v1424_v12, 1 }
  0x34   :  { %v152_v17 = vadd.f32 %v151_v14, %v137_v0  ;;  %v187_v31 = vmul.f32 %v171_v18, %v1415_v4  ;;  %v197_v32 = vadd.f32 %v196_v22, %v182_v7  ;;  %v1442_v34 = vsub.f32 %v1353_v21, %v1372_v40 }
  0x35   :  { %v126_v35 = vperm.slane %v1433_v23, 0  ;;  %v212_v37 = vperm.slane %v1378_v42, 2  ;;  %v141_v38 = vmul.f32 %v125_v25, %v1424_v12  ;;  %v173_v39 = vperm.slane %v1433_v23, 1 }
  0x36   :  { %v153_v19 = vadd.f32 %v152_v17, %v138_v8  ;;  %v188_v46 = vmul.f32 %v172_v29, %v1424_v12  ;;  %v198_v47 = vadd.f32 %v197_v32, %v183_v10  ;;  %v1451_v48 = vsub.f32 %v1356_v24, %v1372_v40 }
  0x37   :  { %v127_v49 = vperm.slane %v1442_v34, 0  ;;  %v213_v50 = vperm.slane %v1381_v43, 2  ;;  %v142_v51 = vmul.f32 %v126_v35, %v1433_v23  ;;  %v174_v52 = vperm.slane %v1442_v34, 1 }
  0x38   :  { %v154_v21 = vadd.f32 %v153_v19, %v139_v16  ;;  %v189_v54 = vmul.f32 %v173_v39, %v1433_v23  ;;  %v199_v55 = vadd.f32 %v198_v47, %v184_v11  ;;  %v1460_v56 = vsub.f32 %v1359_v27, %v1372_v40 }
  0x39   :  { %v128_v57 = vperm.slane %v1451_v48, 0  ;;  %v214_v58 = vperm.slane %v1384_v44, 2  ;;  %v143_v59 = vmul.f32 %v127_v49, %v1442_v34  ;;  %v175_v61 = vperm.slane %v1451_v48, 1 }
  0x3a   :  { %v155_v24 = vadd.f32 %v154_v21, %v140_v28  ;;  %v190_v62 = vmul.f32 %v174_v52, %v1442_v34  ;;  %v200_v63 = vadd.f32 %v199_v55, %v185_v15  ;;  %v1469_v0 = vsub.f32 %v1362_v30, %v1372_v40 }
  0x3b   :  { %v129_v1 = vperm.slane %v1460_v56, 0  ;;  %v215_v2 = vperm.slane %v1387_v45, 2  ;;  %v144_v3 = vmul.f32 %v128_v57, %v1451_v48  ;;  %v176_v5 = vperm.slane %v1460_v56, 1 }
  0x3c   :  { %v156_v27 = vadd.f32 %v155_v24, %v141_v38  ;;  %v191_v6 = vmul.f32 %v175_v61, %v1451_v48  ;;  %v201_v7 = vadd.f32 %v200_v63, %v186_v20  ;;  %v1478_v8 = vsub.f32 %v1365_v33, %v1372_v40 }
  0x3d   :  { %v130_v9 = vperm.slane %v1469_v0, 0  ;;  %v216_v10 = vperm.slane %v1397_v53, 2  ;;  %v145_v11 = vmul.f32 %v129_v1, %v1460_v56  ;;  %v177_v13 = vperm.slane %v1469_v0, 1 }
  0x3e   :  { %v157_v30 = vadd.f32 %v156_v27, %v142_v51  ;;  %v192_v14 = vmul.f32 %v176_v5, %v1460_v56  ;;  %v202_v15 = vadd.f32 %v201_v7, %v187_v31  ;;  %v1487_v16 = vsub.f32 %v1368_v36, %v1372_v40 }
  0x3f   :  { %v131_v18 = vperm.slane %v1478_v8, 0  ;;  %v217_v20 = vperm.slane %v1406_v60, 2  ;;  %v146_v22 = vmul.f32 %v130_v9, %v1469_v0  ;;  %v178_v25 = vperm.slane %v1478_v8, 1 }
  0x40   :  { %v158_v33 = vadd.f32 %v157_v30, %v143_v59  ;;  %v193_v17 = vmul.f32 %v177_v13, %v1469_v0  ;;  %v203_v28 = vadd.f32 %v202_v15, %v188_v46  ;;  %v132_v29 = vperm.slane %v1487_v16, 0 }
  0x41   :  { %v179_v31 = vperm.slane %v1487_v16, 1  ;;  %v218_v36 = vperm.slane %v1415_v4, 2  ;;  %v147_v40 = vmul.f32 %v131_v18, %v1478_v8  ;;  %v194_v35 = vmul.f32 %v178_v25, %v1478_v8 }
  0x42   :  { %v159_v32 = vadd.f32 %v158_v33, %v144_v3  ;;  %v204_v19 = vadd.f32 %v203_v28, %v189_v54  ;;  %v219_v38 = vperm.slane %v1424_v12, 2  ;;  %v148_v39 = vmul.f32 %v132_v29, %v1487_v16 }
  0x43   :  { %v195_v49 = vmul.f32 %v179_v31, %v1487_v16  ;;  %v220_v46 = vperm.slane %v1433_v23, 2  ;;  %v221_v51 = vperm.slane %v1442_v34, 2  ;;  %v222_v52 = vperm.slane %v1451_v48, 2 }
  0x44   :  { %v160_v47 = vadd.f32 %v159_v32, %v145_v11  ;;  %v205_v21 = vadd.f32 %v204_v19, %v190_v62  ;;  %v223_v55 = vperm.slane %v1460_v56, 2  ;;  %v224_v24 = vperm.slane %v1469_v0, 2 }
  0x45   :  { %v225_v54 = vperm.slane %v1478_v8, 2  ;;  %v226_v59 = vperm.slane %v1487_v16, 2  ;;  %v227_v63 = vmul.f32 %v211_v26, %v1375_v41  ;;  %v228_v62 = vmul.f32 %v212_v37, %v1378_v42 }
  0x46   :  { %v161_v57 = vadd.f32 %v160_v47, %v146_v22  ;;  %v206_v61 = vadd.f32 %v205_v21, %v191_v6  ;;  %v229_v1 = vmul.f32 %v213_v50, %v1381_v43  ;;  %v230_v3 = vmul.f32 %v214_v58, %v1384_v44 }
  0x47   :  { %v231_v5 = vmul.f32 %v215_v2, %v1387_v45  ;;  %v232_v7 = vmul.f32 %v216_v10, %v1397_v53  ;;  %v233_v6 = vmul.f32 %v217_v20, %v1406_v60  ;;  %v234_v30 = vmul.f32 %v218_v36, %v1415_v4 }
  0x48   :  { %v162_v27 = vadd.f32 %v161_v57, %v147_v40  ;;  %v207_v9 = vadd.f32 %v206_v61, %v192_v14  ;;  %v1522_v26 = vmul.f32 %v219_v38, %v1424_v12  ;;  %v1527_v37 = vmul.f32 %v220_v46, %v1433_v23 }
  0x49   :  { %v1530_v50 = vmul.f32 %v221_v51, %v1442_v34  ;;  %v1533_v58 = vmul.f32 %v222_v52, %v1451_v48  ;;  %v1536_v10 = vmul.f32 %v223_v55, %v1460_v56  ;;  %v1539_v13 = vmul.f32 %v224_v24, %v1469_v0 }
  0x4a   :  { %v1524_v11 = vadd.f32 %v162_v27, %v148_v39  ;;  %v208_v2 = vadd.f32 %v207_v9, %v193_v17  ;;  %v1542_v14 = vmul.f32 %v225_v54, %v1478_v8  ;;  %v1545_v15 = vmul.f32 %v226_v59, %v1487_v16 }
  0x4b   :  { %v243_v18 = vadd.f32 %v228_v62, %v227_v63  ;;  %v258_v33 = vperm.slane %v1375_v41, 3  ;;  %v259_v20 = vperm.slane %v1378_v42, 3  ;;  %v260_v25 = vperm.slane %v1381_v43, 3 }
  0x4c   :  { %v209_v22 = vadd.f32 %v208_v2, %v194_v35  ;;  %v261_v17 = vperm.slane %v1384_v44, 3  ;;  %v262_v28 = vperm.slane %v1387_v45, 3  ;;  %v263_v32 = vperm.slane %v1397_v53, 3 }
  0x4d   :  { %v244_v29 = vadd.f32 %v243_v18, %v229_v1  ;;  %v264_v31 = vperm.slane %v1406_v60, 3  ;;  %v265_v36 = vperm.slane %v1415_v4, 3  ;;  %v266_v19 = vperm.slane %v1424_v12, 3 }
  0x4e   :  { %v1555_v40 = vadd.f32 %v209_v22, %v195_v49  ;;  %v267_v38 = vperm.slane %v1433_v23, 3  ;;  %v268_v35 = vperm.slane %v1442_v34, 3  ;;  %v269_v47 = vperm.slane %v1451_v48, 3 }
  0x4f   :  { %v245_v39 = vadd.f32 %v244_v29, %v230_v3  ;;  %v270_v46 = vperm.slane %v1460_v56, 3  ;;  %v271_v21 = vperm.slane %v1469_v0, 3  ;;  %v272_v51 = vperm.slane %v1478_v8, 3 }
  0x50   :  { %v273_v52 = vperm.slane %v1487_v16, 3  ;;  %v274_v49 = vmul.f32 %v258_v33, %v1375_v41  ;;  %v275_v55 = vmul.f32 %v259_v20, %v1378_v42  ;;  %v276_v24 = vmul.f32 %v260_v25, %v1381_v43 }
  0x51   :  { %v246_v57 = vadd.f32 %v245_v39, %v231_v5  ;;  %v277_v54 = vmul.f32 %v261_v17, %v1384_v44  ;;  %v278_v59 = vmul.f32 %v262_v28, %v1387_v45  ;;  %v279_v61 = vmul.f32 %v263_v32, %v1397_v53 }
  0x52   :  { %v280_v63 = vmul.f32 %v264_v31, %v1406_v60  ;;  %v1573_v62 = vmul.f32 %v265_v36, %v1415_v4  ;;  %v1576_v1 = vmul.f32 %v266_v19, %v1424_v12  ;;  %v1579_v3 = vmul.f32 %v267_v38, %v1433_v23 }
  0x53   :  { %v247_v27 = vadd.f32 %v246_v57, %v232_v7  ;;  %v1582_v5 = vmul.f32 %v268_v35, %v1442_v34  ;;  %v1585_v9 = vmul.f32 %v269_v47, %v1451_v48  ;;  %v36_v2 = vlaneseq }
  0x54   :  { %v1588_v18 = vmul.f32 %v270_v46, %v1460_v56  ;;  %v1591_v33 = vmul.f32 %v271_v21, %v1469_v0  ;;  %v1594_v20 = vmul.f32 %v272_v51, %v1478_v8  ;;  %v1597_v22 = vmul.f32 %v273_v52, %v1487_v16 }
  0x55   :  { %v248_v7 = vadd.f32 %v247_v27, %v233_v6  ;;  %v290_v25 = vadd.f32 %v275_v55, %v274_v49  ;;  %v305_v17 = vperm.slane %v1375_v41, 4  ;;  %v37_v28 = vshrl.u32 %v36_v2, 7 }
  0x56   :  { %v306_v29 = vperm.slane %v1378_v42, 4  ;;  %v307_v32 = vperm.slane %v1381_v43, 4  ;;  %v308_v31 = vperm.slane %v1384_v44, 4  ;;  %v309_v38 = vperm.slane %v1387_v45, 4 }
  0x57   :  { %v249_v36 = vadd.f32 %v248_v7, %v234_v30  ;;  %v291_v19 = vadd.f32 %v290_v25, %v276_v24  ;;  %v310_v35 = vperm.slane %v1397_v53, 4  ;;  %vm38_vm1 = vcmp.eq.s32.totalorder %v37_v28, 0 }
  0x58   :  { %vm39_vm2 = vcmp.eq.s32.totalorder %v37_v28, 1  ;;  %vm40_vm3 = vcmp.eq.s32.totalorder %v37_v28, 2  ;;  %vm41_vm4 = vcmp.eq.s32.totalorder %v37_v28, 3  ;;  %vm42_vm5 = vcmp.eq.s32.totalorder %v37_v28, 4 }
  0x59   :  { %vm43_vm6 = vcmp.eq.s32.totalorder %v37_v28, 5  ;;  %vm44_vm7 = vcmp.eq.s32.totalorder %v37_v28, 6  ;;  %vm45_vm8 = vcmp.eq.s32.totalorder %v37_v28, 7  ;;  %v250_v6 = vadd.f32 %v249_v36, %v1522_v26 }
  0x5a   :  { %v292_v39 = vadd.f32 %v291_v19, %v277_v54  ;;  %v311_v47 = vperm.slane %v1406_v60, 4  ;;  %v1306_v46 = vmov 0.0   ;;  %v312_v27 = vperm.slane %v1415_v4, 4 }
  0x5b   :  { %v1607_v30 = vsel %vm38_vm1, 1.0, %v1306_v46  ;;  %v1609_v21 = vsel %vm39_vm2, 1.0, %v1306_v46  ;;  %v1611_v51 = vsel %vm40_vm3, 1.0, %v1306_v46  ;;  %v1613_v52 = vsel %vm41_vm4, 1.0, %v1306_v46 }
  0x5c   :  { %2216 = vst [vmem:[#allocation9_spill] sm:$0xff] %v1607_v30  ;;  %v1615_v49 = vsel %vm42_vm5, 1.0, %v1306_v46  ;;  %v1617_v55 = vsel %vm43_vm6, 1.0, %v1306_v46  ;;  %v1619_v57 = vsel %vm44_vm7, 1.0, %v1306_v46  ;;  %v1621_v24 = vsel %vm45_vm8, 1.0, %v1306_v46 }
  0x5d   :  { %2217 = vst [vmem:[#allocation10_spill] sm:$0xff] %v1609_v21  ;;  %v251_v26 = vadd.f32 %v250_v6, %v1527_v37  ;;  %v293_v54 = vadd.f32 %v292_v39, %v278_v59  ;;  %v313_v2 = vperm.slane %v1424_v12, 4  ;;  %v314_v7 = vperm.slane %v1433_v23, 4 }
  0x5e   :  { %2218 = vst [vmem:[#allocation11_spill] sm:$0xff] %v1611_v51  ;;  %v315_v25 = vperm.slane %v1442_v34, 4  ;;  %v316_v28 = vperm.slane %v1451_v48, 4  ;;  %v317_v36 = vperm.slane %v1460_v56, 4  ;;  %v318_v46 = vperm.slane %v1469_v0, 4 }
  0x5f   :  { %2219 = vst [vmem:[#allocation12_spill] sm:$0xff] %v1613_v52  ;;  %v252_v19 = vadd.f32 %v251_v26, %v1530_v50  ;;  %v319_v37 = vperm.slane %v1478_v8, 4  ;;  %v320_v59 = vperm.slane %v1487_v16, 4  ;;  %v321_v6 = vmul.f32 %v305_v17, %v1375_v41 }
  0x60   :  { %2220 = vst [vmem:[#allocation13_spill] sm:$0xff] %v1615_v49  ;;  %v322_v39 = vmul.f32 %v306_v29, %v1378_v42  ;;  %v324_v51 = vmul.f32 %v308_v31, %v1384_v44  ;;  %v325_v50 = vmul.f32 %v309_v38, %v1387_v45  ;;  %v327_v26 = vmul.f32 %v311_v47, %v1406_v60 }
  0x61   :  { %2221 = vst [vmem:[#allocation14_spill] sm:$0xff] %v1617_v55  ;;  %v323_v55 = vmul.f32 %v307_v32, %v1381_v43  ;;  %v253_v49 = vadd.f32 %v252_v19, %v1533_v58  ;;  %v1644_v21 = vmul.f32 %v313_v2, %v1424_v12  ;;  %v1649_v58 = vmul.f32 %v314_v7, %v1433_v23 }
  0x62   :  { %2222 = vst [vmem:[#allocation15_spill] sm:$0xff] %v1619_v57  ;;  %v294_v57 = vadd.f32 %v293_v54, %v279_v61  ;;  %v326_v61 = vmul.f32 %v310_v35, %v1397_v53  ;;  %v328_v54 = vmul.f32 %v312_v27, %v1415_v4  ;;  %v1655_v32 = vmul.f32 %v316_v28, %v1451_v48 }
  0x63   :  { %2223 = vst [vmem:[#allocation16_spill] sm:$0xff] %v1621_v24  ;;  %v254_v17 = vadd.f32 %v253_v49, %v1536_v10  ;;  %v1658_v31 = vmul.f32 %v317_v36, %v1460_v56  ;;  %v1661_v38 = vmul.f32 %v318_v46, %v1469_v0  ;;  %v1664_v35 = vmul.f32 %v319_v37, %v1478_v8 }
  0x64   :  { %v295_v52 = vadd.f32 %v294_v57, %v280_v63  ;;  %v1652_v63 = vmul.f32 %v315_v25, %v1442_v34  ;;  %v1669_v47 = vmul.f32 %v320_v59, %v1487_v16  ;;  %v352_v49 = vperm.slane %v1375_v41, 5 }
  0x65   :  { %v255_v10 = vadd.f32 %v254_v17, %v1539_v13  ;;  %v353_v57 = vperm.slane %v1378_v42, 5  ;;  %v354_v27 = vperm.slane %v1381_v43, 5  ;;  %v355_v2 = vperm.slane %v1384_v44, 5 }
  0x66   :  { %v296_v29 = vadd.f32 %v295_v52, %v1573_v62  ;;  %v337_v52 = vadd.f32 %v322_v39, %v321_v6  ;;  %v356_v13 = vperm.slane %v1387_v45, 5  ;;  %v358_v36 = vperm.slane %v1406_v60, 5 }
  0x67   :  { %v256_v7 = vadd.f32 %v255_v10, %v1542_v14  ;;  %v359_v19 = vperm.slane %v1415_v4, 5  ;;  %v360_v46 = vperm.slane %v1424_v12, 5  ;;  %v361_v14 = vperm.slane %v1433_v23, 5 }
  0x68   :  { %v297_v62 = vadd.f32 %v296_v29, %v1576_v1  ;;  %v338_v28 = vadd.f32 %v337_v52, %v323_v55  ;;  %v357_v1 = vperm.slane %v1397_v53, 5  ;;  %v363_v55 = vperm.slane %v1451_v48, 5 }
  0x69   :  { %v1683_v37 = vadd.f32 %v256_v7, %v1545_v15  ;;  %v364_v39 = vperm.slane %v1460_v56, 5  ;;  %v365_v17 = vperm.slane %v1469_v0, 5  ;;  %v367_v15 = vperm.slane %v1487_v16, 5 }
  0x6a   :  { %v298_v25 = vadd.f32 %v297_v62, %v1579_v3  ;;  %v339_v6 = vadd.f32 %v338_v28, %v324_v51  ;;  %v362_v3 = vperm.slane %v1442_v34, 5  ;;  %v366_v62 = vperm.slane %v1478_v8, 5 }
  0x6b   :  { %v369_v51 = vmul.f32 %v353_v57, %v1378_v42  ;;  %v370_v52 = vmul.f32 %v354_v27, %v1381_v43  ;;  %v371_v7 = vmul.f32 %v355_v2, %v1384_v44  ;;  %v372_v24 = vmul.f32 %v356_v13, %v1387_v45 }
  0x6c   :  { %v299_v59 = vadd.f32 %v298_v25, %v1582_v5  ;;  %v340_v10 = vadd.f32 %v339_v6, %v325_v50  ;;  %v368_v5 = vmul.f32 %v352_v49, %v1375_v41  ;;  %v374_v50 = vmul.f32 %v358_v36, %v1406_v60 }
  0x6d   :  { %v1704_v6 = vmul.f32 %v360_v46, %v1424_v12  ;;  %v1707_v49 = vmul.f32 %v361_v14, %v1433_v23  ;;  %v1717_v2 = vmul.f32 %v364_v39, %v1460_v56  ;;  %v1720_v13 = vmul.f32 %v365_v17, %v1469_v0 }
  0x6e   :  { %v300_v29 = vadd.f32 %v299_v59, %v1585_v9  ;;  %v341_v28 = vadd.f32 %v340_v10, %v326_v61  ;;  %v373_v9 = vmul.f32 %v357_v1, %v1397_v53  ;;  %v375_v59 = vmul.f32 %v359_v19, %v1415_v4 }
  0x6f   :  { %v1714_v61 = vmul.f32 %v363_v55, %v1451_v48  ;;  %v1723_v1 = vmul.f32 %v366_v62, %v1478_v8  ;;  %v384_v36 = vadd.f32 %v369_v51, %v368_v5  ;;  %v399_v46 = vperm.slane %v1375_v41, 6 }
  0x70   :  { %v301_v25 = vadd.f32 %v300_v29, %v1588_v18  ;;  %v342_v27 = vadd.f32 %v341_v28, %v327_v26  ;;  %v1711_v18 = vmul.f32 %v362_v3, %v1442_v34  ;;  %v1727_v26 = vmul.f32 %v367_v15, %v1487_v16 }
  0x71   :  { %v385_v14 = vadd.f32 %v384_v36, %v370_v52  ;;  %v400_v3 = vperm.slane %v1378_v42, 6  ;;  %v401_v55 = vperm.slane %v1381_v43, 6  ;;  %v402_v39 = vperm.slane %v1384_v44, 6 }
  0x72   :  { %v302_v57 = vadd.f32 %v301_v25, %v1591_v33  ;;  %v343_v33 = vadd.f32 %v342_v27, %v328_v54  ;;  %2224 = vst [vmem:[#allocation17_spill] sm:$0xff] %v1727_v26  ;;  %v404_v54 = vperm.slane %v1397_v53, 6  ;;  %v405_v62 = vperm.slane %v1406_v60, 6 }
  0x73   :  { %v386_v10 = vadd.f32 %v385_v14, %v371_v7  ;;  %v406_v15 = vperm.slane %v1415_v4, 6  ;;  %v407_v5 = vperm.slane %v1424_v12, 6  ;;  %v408_v52 = vperm.slane %v1433_v23, 6 }
  0x74   :  { %v303_v19 = vadd.f32 %v302_v57, %v1594_v20  ;;  %v344_v29 = vadd.f32 %v343_v33, %v1644_v21  ;;  %v403_v20 = vperm.slane %v1387_v45, 6  ;;  %v410_v25 = vperm.slane %v1451_v48, 6 }
  0x75   :  { %v387_v21 = vadd.f32 %v386_v10, %v372_v24  ;;  %v411_v28 = vperm.slane %v1460_v56, 6  ;;  %v412_v57 = vperm.slane %v1469_v0, 6  ;;  %v413_v7 = vperm.slane %v1478_v8, 6 }
  0x76   :  { %v1734_v17 = vadd.f32 %v303_v19, %v1597_v22  ;;  %v345_v51 = vadd.f32 %v344_v29, %v1649_v58  ;;  %v409_v22 = vperm.slane %v1442_v34, 6  ;;  %v414_v36 = vperm.slane %v1487_v16, 6 }
  0x77   :  { %v415_v19 = vmul.f32 %v399_v46, %v1375_v41  ;;  %v416_v58 = vmul.f32 %v400_v3, %v1378_v42  ;;  %v388_v33 = vadd.f32 %v387_v21, %v373_v9  ;;  %v417_v14 = vmul.f32 %v401_v55, %v1381_v43 }
  0x78   :  { %v346_v27 = vadd.f32 %v345_v51, %v1652_v63  ;;  %v418_v29 = vmul.f32 %v402_v39, %v1384_v44  ;;  %v419_v24 = vmul.f32 %v403_v20, %v1387_v45  ;;  %v420_v26 = vmul.f32 %v404_v54, %v1397_v53 }
  0x79   :  { %v421_v63 = vmul.f32 %v405_v62, %v1406_v60  ;;  %v422_v51 = vmul.f32 %v406_v15, %v1415_v4  ;;  %v389_v46 = vadd.f32 %v388_v33, %v374_v50  ;;  %v1763_v3 = vmul.f32 %v407_v5, %v1424_v12 }
  0x7a   :  { %v1756_v10 = vpop.permute.xlu0 %688   ;;  %v347_v30 = vadd.f32 %v346_v27, %v1655_v32  ;;  %v1766_v9 = vmul.f32 %v408_v52, %v1433_v23  ;;  %v1769_v55 = vmul.f32 %v409_v22, %v1442_v34  ;;  %v1773_v32 = vmul.f32 %v410_v25, %v1451_v48 }
  0x7b   :  { %2225 = vst [vmem:[#allocation18_spill] sm:$0xff] %v1756_v10  ;;  %v1776_v20 = vmul.f32 %v411_v28, %v1460_v56  ;;  %v1779_v54 = vmul.f32 %v412_v57, %v1469_v0  ;;  %v390_v50 = vadd.f32 %v389_v46, %v375_v59  ;;  %v1782_v62 = vmul.f32 %v413_v7, %v1478_v8 }
  0x7c   :  { %v348_v39 = vadd.f32 %v347_v30, %v1658_v31  ;;  %v1785_v15 = vmul.f32 %v414_v36, %v1487_v16  ;;  %v431_v5 = vadd.f32 %v416_v58, %v415_v19  ;;  %v446_v30 = vperm.slane %v1375_v41, 7 }
  0x7d   :  { %v447_v31 = vperm.slane %v1378_v42, 7  ;;  %v448_v22 = vperm.slane %v1381_v43, 7  ;;  %v391_v25 = vadd.f32 %v390_v50, %v1704_v6  ;;  %v449_v59 = vperm.slane %v1384_v44, 7 }
  0x7e   :  { %2226 = vst [vmem:[#allocation19_spill] sm:$0xff] %v1785_v15  ;;  %v349_v52 = vadd.f32 %v348_v39, %v1661_v38  ;;  %v432_v21 = vadd.f32 %v431_v5, %v417_v14  ;;  %v450_v28 = vperm.slane %v1387_v45, 7  ;;  %v451_v7 = vperm.slane %v1397_v53, 7 }
  0x7f   :  { %v452_v27 = vperm.slane %v1406_v60, 7  ;;  %v453_v38 = vperm.slane %v1415_v4, 7  ;;  %v392_v36 = vadd.f32 %v391_v25, %v1707_v49  ;;  %v454_v58 = vperm.slane %v1424_v12, 7 }
  0x80   :  { %v350_v57 = vadd.f32 %v349_v52, %v1664_v35  ;;  %v433_v19 = vadd.f32 %v432_v21, %v418_v29  ;;  %v455_v6 = vperm.slane %v1433_v23, 7  ;;  %v456_v14 = vperm.slane %v1442_v34, 7 }
  0x81   :  { %v457_v46 = vperm.slane %v1451_v48, 7  ;;  %v458_v35 = vperm.slane %v1460_v56, 7  ;;  %v393_v39 = vadd.f32 %v392_v36, %v1711_v18  ;;  %v459_v5 = vperm.slane %v1469_v0, 7 }
  0x82   :  { %v351_v33 = vadd.f32 %v350_v57, %v1669_v47  ;;  %v434_v50 = vadd.f32 %v433_v19, %v419_v24  ;;  %v460_v49 = vperm.slane %v1478_v8, 7  ;;  %v461_v29 = vperm.slane %v1487_v16, 7 }
  0x83   :  { %v462_v52 = vmul.f32 %v446_v30, %v1375_v41  ;;  %v463_v25 = vmul.f32 %v447_v31, %v1378_v42  ;;  %v464_v47 = vmul.f32 %v448_v22, %v1381_v43  ;;  %v394_v21 = vadd.f32 %v393_v39, %v1714_v61 }
  0x84   :  { %v435_v57 = vadd.f32 %v434_v50, %v420_v26  ;;  %v465_v10 = vmul.f32 %v449_v59, %v1384_v44  ;;  %v466_v18 = vmul.f32 %v450_v28, %v1387_v45  ;;  %v467_v24 = vmul.f32 %v451_v7, %v1397_v53 }
  0x85   :  { %v468_v36 = vmul.f32 %v452_v27, %v1406_v60  ;;  %v469_v19 = vmul.f32 %v453_v38, %v1415_v4  ;;  %v1819_v15 = vmul.f32 %v454_v58, %v1424_v12  ;;  %v395_v41 = vadd.f32 %v394_v21, %v1717_v2 }
  0x86   :  { %v436_v42 = vadd.f32 %v435_v57, %v421_v63  ;;  %v1823_v43 = vmul.f32 %v455_v6, %v1433_v23  ;;  %v1826_v61 = vmul.f32 %v456_v14, %v1442_v34  ;;  %v1829_v44 = vmul.f32 %v457_v46, %v1451_v48 }
  0x87   :  { %v1832_v45 = vmul.f32 %v458_v35, %v1460_v56  ;;  %v1835_v53 = vmul.f32 %v459_v5, %v1469_v0  ;;  %v1838_v60 = vmul.f32 %v460_v49, %v1478_v8  ;;  %v396_v4 = vadd.f32 %v395_v41, %v1720_v13 }
  0x88   :  { %v437_v12 = vadd.f32 %v436_v42, %v422_v51  ;;  %v478_v23 = vadd.f32 %v463_v25, %v462_v52  ;;  %v1842_v2 = vmul.f32 0.06666667, %v1524_v11  ;;  %v1845_v34 = vmul.f32 %v461_v29, %v1487_v16 }
  0x89   :  { %v1848_v48 = vmul.f32 0.06666667, %v1555_v40  ;;  %v1851_v56 = vmul.f32 0.06666667, %v1683_v37  ;;  %v1854_v0 = vmul.f32 0.06666667, %v1734_v17  ;;  %v397_v8 = vadd.f32 %v396_v4, %v1723_v1 }
  0x8a   :  { %v438_v13 = vadd.f32 %v437_v12, %v1763_v3  ;;  %v479_v26 = vadd.f32 %v478_v23, %v464_v47  ;;  %v1858_v63 = vmul.f32 0.06666667, %v351_v33  ;;  %v501_v11 = vperm.slane %v1842_v2, 0  ;;  %v2227_v37 = vld [vmem:[#allocation17_spill] sm:$0xff] }
  0x8b   :  { %v502_v16 = vperm.slane %v1848_v48, 0  ;;  %v503_v40 = vperm.slane %v1851_v56, 0  ;;  %v504_v51 = vperm.slane %v1854_v0, 0  ;;  %v398_v30 = vadd.f32 %v397_v8, %v2227_v37 }
  0x8c   :  { %v439_v17 = vadd.f32 %v438_v13, %v1766_v9  ;;  %v480_v31 = vadd.f32 %v479_v26, %v465_v10  ;;  %v505_v1 = vperm.slane %v1858_v63, 0  ;;  %v509_v3 = vmul.f32 %v501_v11, %v1842_v2 }
  0x8d   :  { %v510_v22 = vmul.f32 %v502_v16, %v1842_v2  ;;  %v511_v59 = vmul.f32 %v503_v40, %v1842_v2  ;;  %v512_v28 = vmul.f32 %v504_v51, %v1842_v2  ;;  %v1872_v38 = vmul.f32 0.06666667, %v398_v30  ;;  %v2228_v51 = vld [vmem:[#allocation19_spill] sm:$0xff] }
  0x8e   :  { %v440_v7 = vadd.f32 %v439_v17, %v1769_v55  ;;  %v481_v27 = vadd.f32 %v480_v31, %v466_v18  ;;  %v513_v58 = vmul.f32 %v505_v1, %v1842_v2  ;;  %v517_v9 = vperm.slane %v1842_v2, 1 }
  0x8f   :  { %v518_v10 = vperm.slane %v1848_v48, 1  ;;  %v519_v6 = vperm.slane %v1851_v56, 1  ;;  %v520_v33 = vperm.slane %v1854_v0, 1  ;;  %v506_v35 = vperm.slane %v1872_v38, 0 }
  0x90   :  { %v441_v14 = vadd.f32 %v440_v7, %v1773_v32  ;;  %v482_v46 = vadd.f32 %v481_v27, %v467_v24  ;;  %v521_v55 = vperm.slane %v1858_v63, 1  ;;  %v522_v39 = vperm.slane %v1872_v38, 1 }
  0x91   :  { %v525_v50 = vmul.f32 %v517_v9, %v1848_v48  ;;  %v526_v5 = vmul.f32 %v518_v10, %v1848_v48  ;;  %v527_v49 = vmul.f32 %v519_v6, %v1848_v48  ;;  %v514_v25 = vmul.f32 %v506_v35, %v1842_v2 }
  0x92   :  { %v442_v29 = vadd.f32 %v441_v14, %v1776_v20  ;;  %v483_v52 = vadd.f32 %v482_v46, %v468_v36  ;;  %v528_v32 = vmul.f32 %v520_v33, %v1848_v48  ;;  %v529_v47 = vmul.f32 %v521_v55, %v1848_v48 }
  0x93   :  { %v530_v21 = vmul.f32 %v522_v39, %v1848_v48  ;;  %v533_v57 = vadd.f32 %v525_v50, %v509_v3  ;;  %v534_v18 = vadd.f32 %v526_v5, %v510_v22  ;;  %v535_v42 = vadd.f32 %v527_v49, %v511_v59 }
  0x94   :  { %v443_v24 = vadd.f32 %v442_v29, %v1779_v54  ;;  %v484_v41 = vadd.f32 %v483_v52, %v469_v19  ;;  %v536_v4 = vadd.f32 %v528_v32, %v512_v28  ;;  %v537_v12 = vadd.f32 %v529_v47, %v513_v58 }
  0x95   :  { %v538_v23 = vadd.f32 %v530_v21, %v514_v25  ;;  %v541_v20 = vperm.slane %v1842_v2, 2  ;;  %v542_v36 = vperm.slane %v1848_v48, 2  ;;  %v543_v26 = vperm.slane %v1851_v56, 2 }
  0x96   :  { %v444_v8 = vadd.f32 %v443_v24, %v1782_v62  ;;  %v485_v13 = vadd.f32 %v484_v41, %v1819_v15  ;;  %v544_v11 = vperm.slane %v1854_v0, 2  ;;  %v545_v16 = vperm.slane %v1858_v63, 2 }
  0x97   :  { %v546_v54 = vperm.slane %v1872_v38, 2  ;;  %v549_v19 = vmul.f32 %v541_v20, %v1851_v56  ;;  %v550_v40 = vmul.f32 %v542_v36, %v1851_v56  ;;  %v551_v62 = vmul.f32 %v543_v26, %v1851_v56 }
  0x98   :  { %v445_v37 = vadd.f32 %v444_v8, %v2228_v51  ;;  %v486_v30 = vadd.f32 %v485_v13, %v1823_v43  ;;  %v552_v15 = vmul.f32 %v544_v11, %v1851_v56  ;;  %v553_v17 = vmul.f32 %v545_v16, %v1851_v56 }
  0x99   :  { %v554_v31 = vmul.f32 %v546_v54, %v1851_v56  ;;  %v557_v1 = vadd.f32 %v549_v19, %v533_v57  ;;  %v558_v3 = vadd.f32 %v550_v40, %v534_v18  ;;  %v559_v28 = vadd.f32 %v551_v62, %v535_v42 }
  0x9a   :  { %v487_v22 = vadd.f32 %v486_v30, %v1826_v61  ;;  %v1909_v59 = vmul.f32 0.06666667, %v445_v37  ;;  %v560_v7 = vadd.f32 %v552_v15, %v536_v4  ;;  %v561_v27 = vadd.f32 %v553_v17, %v537_v12 }
  0x9b   :  { %v562_v58 = vadd.f32 %v554_v31, %v538_v23  ;;  %v565_v43 = vperm.slane %v1842_v2, 3  ;;  %v566_v9 = vperm.slane %v1848_v48, 3  ;;  %v567_v61 = vperm.slane %v1851_v56, 3 }
  0x9c   :  { %v488_v10 = vadd.f32 %v487_v22, %v1829_v44  ;;  %v507_v6 = vperm.slane %v1909_v59, 0  ;;  %v523_v33 = vperm.slane %v1909_v59, 1  ;;  %v547_v14 = vperm.slane %v1909_v59, 2 }
  0x9d   :  { %v568_v46 = vperm.slane %v1854_v0, 3  ;;  %v569_v35 = vperm.slane %v1858_v63, 3  ;;  %v570_v55 = vperm.slane %v1872_v38, 3  ;;  %v571_v49 = vperm.slane %v1909_v59, 3 }
  0x9e   :  { %v489_v39 = vadd.f32 %v488_v10, %v1832_v45  ;;  %v515_v50 = vmul.f32 %v507_v6, %v1842_v2  ;;  %v531_v44 = vmul.f32 %v523_v33, %v1848_v48  ;;  %v555_v5 = vmul.f32 %v547_v14, %v1851_v56 }
  0x9f   :  { %v573_v29 = vmul.f32 %v565_v43, %v1854_v0  ;;  %v574_v52 = vmul.f32 %v566_v9, %v1854_v0  ;;  %v575_v25 = vmul.f32 %v567_v61, %v1854_v0  ;;  %v576_v21 = vmul.f32 %v568_v46, %v1854_v0 }
  0xa0   :  { %v490_v32 = vadd.f32 %v489_v39, %v1835_v53  ;;  %v539_v47 = vadd.f32 %v531_v44, %v515_v50  ;;  %v577_v45 = vmul.f32 %v569_v35, %v1854_v0  ;;  %v578_v57 = vmul.f32 %v570_v55, %v1854_v0 }
  0xa1   :  { %v579_v18 = vmul.f32 %v571_v49, %v1854_v0  ;;  %v581_v24 = vadd.f32 %v573_v29, %v557_v1  ;;  %v582_v41 = vadd.f32 %v574_v52, %v558_v3  ;;  %v583_v12 = vadd.f32 %v575_v25, %v559_v28 }
  0xa2   :  { %v491_v42 = vadd.f32 %v490_v32, %v1838_v60  ;;  %v563_v4 = vadd.f32 %v555_v5, %v539_v47  ;;  %v584_v23 = vadd.f32 %v576_v21, %v560_v7  ;;  %v585_v20 = vadd.f32 %v577_v45, %v561_v27 }
  0xa3   :  { %v586_v36 = vadd.f32 %v578_v57, %v562_v58  ;;  %v589_v53 = vperm.slane %v1842_v2, 4  ;;  %v590_v8 = vperm.slane %v1848_v48, 4  ;;  %v591_v11 = vperm.slane %v1851_v56, 4 }
  0xa4   :  { %v492_v13 = vadd.f32 %v491_v42, %v1845_v34  ;;  %v587_v26 = vadd.f32 %v579_v18, %v563_v4  ;;  %v592_v16 = vperm.slane %v1854_v0, 4  ;;  %v593_v54 = vperm.slane %v1858_v63, 4 }
  0xa5   :  { %v594_v60 = vperm.slane %v1872_v38, 4  ;;  %v595_v19 = vperm.slane %v1909_v59, 4  ;;  %v597_v40 = vmul.f32 %v589_v53, %v1858_v63  ;;  %v598_v37 = vmul.f32 %v590_v8, %v1858_v63 }
  0xa6   :  { %v1944_v51 = vmul.f32 0.06666667, %v492_v13  ;;  %v599_v30 = vmul.f32 %v591_v11, %v1858_v63  ;;  %v600_v34 = vmul.f32 %v592_v16, %v1858_v63  ;;  %v601_v62 = vmul.f32 %v593_v54, %v1858_v63 }
  0xa7   :  { %v602_v15 = vmul.f32 %v594_v60, %v1858_v63  ;;  %v603_v17 = vmul.f32 %v595_v19, %v1858_v63  ;;  %v605_v31 = vadd.f32 %v597_v40, %v581_v24  ;;  %v606_v27 = vadd.f32 %v598_v37, %v582_v41 }
  0xa8   :  { %v508_v1 = vperm.slane %v1944_v51, 0  ;;  %v524_v3 = vperm.slane %v1944_v51, 1  ;;  %v548_v22 = vperm.slane %v1944_v51, 2  ;;  %v572_v28 = vperm.slane %v1944_v51, 3 }
  0xa9   :  { %v596_v7 = vperm.slane %v1944_v51, 4  ;;  %v607_v58 = vadd.f32 %v599_v30, %v583_v12  ;;  %v608_v43 = vadd.f32 %v600_v34, %v584_v23  ;;  %v609_v61 = vadd.f32 %v601_v62, %v585_v20 }
  0xaa   :  { %v516_v9 = vmul.f32 %v508_v1, %v1842_v2  ;;  %v532_v10 = vmul.f32 %v524_v3, %v1848_v48  ;;  %v556_v6 = vmul.f32 %v548_v22, %v1851_v56  ;;  %v580_v33 = vmul.f32 %v572_v28, %v1854_v0 }
  0xab   :  { %v604_v14 = vmul.f32 %v596_v7, %v1858_v63  ;;  %v610_v46 = vadd.f32 %v602_v15, %v586_v36  ;;  %v611_v35 = vadd.f32 %v603_v17, %v587_v26  ;;  %v613_v39 = vperm.slane %v1842_v2, 5 }
  0xac   :  { %v540_v55 = vadd.f32 %v532_v10, %v516_v9  ;;  %v614_v50 = vperm.slane %v1848_v48, 5  ;;  %v615_v44 = vperm.slane %v1851_v56, 5  ;;  %v616_v5 = vperm.slane %v1854_v0, 5 }
  0xad   :  { %v617_v49 = vperm.slane %v1858_v63, 5  ;;  %v618_v29 = vperm.slane %v1872_v38, 5  ;;  %v619_v52 = vperm.slane %v1909_v59, 5  ;;  %v620_v32 = vperm.slane %v1944_v51, 5 }
  0xae   :  { %v564_v25 = vadd.f32 %v556_v6, %v540_v55  ;;  %v621_v47 = vmul.f32 %v613_v39, %v1872_v38  ;;  %v622_v21 = vmul.f32 %v614_v50, %v1872_v38  ;;  %v623_v45 = vmul.f32 %v615_v44, %v1872_v38 }
  0xaf   :  { %v624_v57 = vmul.f32 %v616_v5, %v1872_v38  ;;  %v625_v18 = vmul.f32 %v617_v49, %v1872_v38  ;;  %v626_v24 = vmul.f32 %v618_v29, %v1872_v38  ;;  %v627_v42 = vmul.f32 %v619_v52, %v1872_v38 }
  0xb0   :  { %v588_v41 = vadd.f32 %v580_v33, %v564_v25  ;;  %v628_v4 = vmul.f32 %v620_v32, %v1872_v38  ;;  %v629_v12 = vadd.f32 %v621_v47, %v605_v31  ;;  %v630_v23 = vadd.f32 %v622_v21, %v606_v27 }
  0xb1   :  { %v631_v20 = vadd.f32 %v623_v45, %v607_v58  ;;  %v632_v36 = vadd.f32 %v624_v57, %v608_v43  ;;  %v633_v53 = vadd.f32 %v625_v18, %v609_v61  ;;  %v634_v13 = vadd.f32 %v626_v24, %v610_v46 }
  0xb2   :  { %v612_v8 = vadd.f32 %v604_v14, %v588_v41  ;;  %v635_v26 = vadd.f32 %v627_v42, %v611_v35  ;;  %v637_v11 = vperm.slane %v1842_v2, 6  ;;  %v638_v16 = vperm.slane %v1848_v48, 6 }
  0xb3   :  { %v639_v54 = vperm.slane %v1851_v56, 6  ;;  %v640_v60 = vperm.slane %v1854_v0, 6  ;;  %v641_v19 = vperm.slane %v1858_v63, 6  ;;  %v642_v37 = vperm.slane %v1872_v38, 6 }
  0xb4   :  { %v636_v40 = vadd.f32 %v628_v4, %v612_v8  ;;  %v643_v30 = vperm.slane %v1909_v59, 6  ;;  %v644_v34 = vperm.slane %v1944_v51, 6  ;;  %v645_v62 = vmul.f32 %v637_v11, %v1909_v59 }
  0xb5   :  { %v646_v15 = vmul.f32 %v638_v16, %v1909_v59  ;;  %v647_v17 = vmul.f32 %v639_v54, %v1909_v59  ;;  %v648_v31 = vmul.f32 %v640_v60, %v1909_v59  ;;  %v649_v1 = vmul.f32 %v641_v19, %v1909_v59 }
  0xb6   :  { %v650_v3 = vmul.f32 %v642_v37, %v1909_v59  ;;  %v651_v22 = vmul.f32 %v643_v30, %v1909_v59  ;;  %v652_v28 = vmul.f32 %v644_v34, %v1909_v59  ;;  %v653_v7 = vadd.f32 %v645_v62, %v629_v12 }
  0xb7   :  { %v654_v27 = vadd.f32 %v646_v15, %v630_v23  ;;  %v655_v58 = vadd.f32 %v647_v17, %v631_v20  ;;  %v656_v43 = vadd.f32 %v648_v31, %v632_v36  ;;  %v657_v9 = vadd.f32 %v649_v1, %v633_v53 }
  0xb8   :  { %v658_v10 = vadd.f32 %v650_v3, %v634_v13  ;;  %v659_v6 = vadd.f32 %v651_v22, %v635_v26  ;;  %v660_v33 = vadd.f32 %v652_v28, %v636_v40  ;;  %v661_v14 = vperm.slane %v1842_v2, 7 }
  0xb9   :  { %v662_v61 = vperm.slane %v1848_v48, 7  ;;  %v663_v46 = vperm.slane %v1851_v56, 7  ;;  %v664_v35 = vperm.slane %v1854_v0, 7  ;;  %v665_v55 = vperm.slane %v1858_v63, 7 }
  0xba   :  { %v666_v39 = vperm.slane %v1872_v38, 7  ;;  %v667_v50 = vperm.slane %v1909_v59, 7  ;;  %v668_v44 = vperm.slane %v1944_v51, 7  ;;  %v669_v5 = vmul.f32 %v661_v14, %v1944_v51 }
  0xbb   :  { %v670_v49 = vmul.f32 %v662_v61, %v1944_v51  ;;  %v671_v2 = vmul.f32 %v663_v46, %v1944_v51  ;;  %v672_v48 = vmul.f32 %v664_v35, %v1944_v51  ;;  %v673_v56 = vmul.f32 %v665_v55, %v1944_v51 }
  0xbc   :  { %v674_v0 = vmul.f32 %v666_v39, %v1944_v51  ;;  %v675_v63 = vmul.f32 %v667_v50, %v1944_v51  ;;  %v676_v38 = vmul.f32 %v668_v44, %v1944_v51  ;;  %v2010_v29 = vadd.f32 %v669_v5, %v653_v7  ;;  %v2229_v51 = vld [vmem:[#allocation18_spill] sm:$0xff] }
  0xbd   :  { %v2012_v59 = vadd.f32 %v670_v49, %v654_v27  ;;  %v2014_v52 = vadd.f32 %v671_v2, %v655_v58  ;;  %v2016_v25 = vadd.f32 %v672_v48, %v656_v43  ;;  %v2018_v32 = vadd.f32 %v673_v56, %v657_v9 }
  0xbe   :  { %v2020_v47 = vadd.f32 %v674_v0, %v658_v10  ;;  %v2022_v21 = vadd.f32 %v675_v63, %v659_v6  ;;  %v2024_v45 = vadd.f32 %v676_v38, %v660_v33  ;;  %v1307_v57 = vmov 1.0  }
  0xbf   :  { %1124 = vmax.xlane.f32.xlu0 %v1307_v57 }
 0x132   :  { %v1125_v18 = vpop.xlane.xlu0 %1124 }
 0x133   :  { %1145 = vpush %v1125_v18 }
 0x164   :  { %s1146_s1 = spop %1145 }
 0x165   :  { %p1127_p0 = scmp.gt.f32.partialorder %s1146_s1, 0.0 }
 0x166   :  { %v2029_v24 = vmov (%p1127_p0), 1.0   ;;  %v2230_v41 = vld [vmem:[#allocation18_spill] sm:$0xff] (%p1127_p0)  ;;  %s2034_s4 = smov (%p1127_p0), 0  }
 0x167   :  { %1129 = sbr.rel (!%p1127_p0) target bundleno = 751 (0x2ef), region = 37 }
 0x16c LB: > { %1193 = vrcp.f32 %v1291_v41  ;;  %v719_v42 = vperm.slane %v1291_v41, 0  ;;  %v721_v4 = vperm.slane %v1291_v41, 1  ;;  %v724_v12 = vperm.slane %v1291_v41, 2  ;;  %s1080_s9 = sadd.s32 1, %s1295_s4   ;;  %s1295_s4 = sphi %s2034_s4, %s2240_s4   ;;  %v1291_v41 = vphi %v2230_v41, %v2239_v41   ;;  %v1287_v24 = vphi %v2029_v24, %v1079_v24  }
 0x16d   : > { %v727_v23 = vperm.slane %v1291_v41, 3  ;;  %v730_v8 = vperm.slane %v1291_v41, 4  ;;  %v733_v11 = vperm.slane %v1291_v41, 5  ;;  %v749_v16 = vmul.f32 %v1291_v41, %v1291_v41  ;;  %p695_p1 = scmp.lt.s32.totalorder %s1080_s9, 100  ;;  %s2240_s4 = smov %s1080_s9 }
 0x16e   : > { %v720_v20 = vmul.f32 %v719_v42, %v2010_v29  ;;  %v722_v36 = vmul.f32 %v721_v4, %v2012_v59  ;;  %v725_v53 = vmul.f32 %v724_v12, %v2014_v52  ;;  %v736_v40 = vperm.slane %v1291_v41, 6 }
 0x16f   : > { %v728_v26 = vmul.f32 %v727_v23, %v2016_v25  ;;  %v731_v19 = vmul.f32 %v730_v8, %v2018_v32  ;;  %v750_v37 = vrot.slane %v749_v16, 4  ;;  %v734_v34 = vmul.f32 %v733_v11, %v2020_v47 }
 0x170   : > { %v723_v13 = vadd.f32 %v722_v36, %v720_v20  ;;  %v739_v62 = vperm.slane %v1291_v41, 7  ;;  %v737_v1 = vmul.f32 %v736_v40, %v2022_v21  ;;  %vm710_vm9 = vweird.f32 %v1291_v41 }
 0x171   : > { %v751_v17 = vadd.f32 %v750_v37, %v749_v16  ;;  %v716_v14 = vand.u32 2147483648, %v1291_v41  ;;  %v714_v35 = vand.u32 2147483647, %v1291_v41  ;;  %v790_v63 = vstv %s33_s21 }
 0x172   : > { %v1194_v54 = vpop.eup %1193  ;;  %v726_v60 = vadd.f32 %v725_v53, %v723_v13  ;;  %v740_v28 = vmul.f32 %v739_v62, %v2024_v45  ;;  %v780_v36 = vstv %s34_s24  ;;  %v785_v13 = vstv %s1346_s28 }
 0x173   : > { %v706_v15 = vmul.f32 %v1291_v41, %v1194_v54  ;;  %v752_v3 = vrot.slane %v751_v17, 2  ;;  %vm711_vm10 = vweird.f32 %v1194_v54  ;;  %v717_v39 = vor.u32 1.1754944e-38, %v716_v14 }
 0x174   : > { %v729_v30 = vadd.f32 %v728_v26, %v726_v60  ;;  %vm712_vm11 = vmor %vm710_vm9, %vm711_vm10  ;;  %vm715_vm12 = vcmp.eq.f32.partialorder %v714_v35, 8.507059e+37  ;;  %vm704_vm3 = vcmp.gt.f32.partialorder %v1287_v24, 0.5 }
 0x175   : > { %v707_v7 = vsub.f32 1.0, %v706_v15  ;;  %v753_v27 = vadd.f32 %v752_v3, %v751_v17 }
 0x176   : > { %v732_v31 = vadd.f32 %v731_v19, %v729_v30 }
 0x177   : > { %v754_v43 = vrot.slane %v753_v27, 1  ;;  %v708_v10 = vmul.f32 %v1194_v54, %v707_v7 }
 0x178   : > { %v735_v22 = vadd.f32 %v734_v34, %v732_v31 }
 0x179   : > { %v755_v6 = vadd.f32 %v754_v43, %v753_v27  ;;  %v709_v46 = vadd.f32 %v1194_v54, %v708_v10 }
 0x17a   : > { %v738_v58 = vadd.f32 %v737_v1, %v735_v22 }
 0x17b   : > { %1195 = vrsqrt.f32 %v755_v6  ;;  %v713_v5 = vsel %vm712_vm11, %v1194_v54, %v709_v46  ;;  %vm762_vm13 = vweird.f32 %v755_v6  ;;  %v843_v46 = vrot.slane %v1291_v41, 7 }
 0x17c   : > { %v2067_v9 = vadd.f32 %v740_v28, %v738_v58  ;;  %v718_v48 = vsel %vm715_vm12, %v717_v39, %v713_v5  ;;  %v831_v58 = vrot.slane %v1291_v41, 1 }
 0x17d   : > { %v791_v38 = vmul.f32 %v790_v63, %v718_v48  ;;  %v817_v27 = vmul.f32 %v718_v48, %v718_v48 }
 0x17e   : > { %v742_v33 = vmul.f32 %v1291_v41, %v2067_v9  ;;  %v883_v5 = vperm.slane %v2067_v9, 0 }
 0x180   : > { %v743_v61 = vrot.slane %v742_v33, 4 }
 0x181   : > { %v1196_v44 = vpop.eup %1195 }
 0x182   : > { %v744_v55 = vadd.f32 %v743_v61, %v742_v33  ;;  %v757_v2 = vmul.f32 %v1196_v44, %v755_v6  ;;  %vm763_vm14 = vweird.f32 %v1196_v44 }
 0x183   : > { %vm764_vm15 = vmor %vm762_vm13, %vm763_vm14 }
 0x184   : > { %v745_v50 = vrot.slane %v744_v55, 2  ;;  %v758_v0 = vmul.f32 %v1196_v44, %v757_v2 }
 0x186   : > { %v746_v49 = vadd.f32 %v745_v50, %v744_v55  ;;  %v759_v18 = vmul.f32 0.5, %v758_v0 }
 0x188   : > { %v747_v56 = vrot.slane %v746_v49, 1  ;;  %v760_v51 = vsub.f32 1.5, %v759_v18  ;;  %v869_v18 = vrot.slane %v2067_v9, 1 }
 0x18a   : > { %v748_v57 = vadd.f32 %v747_v56, %v746_v49  ;;  %v761_v4 = vmul.f32 %v1196_v44, %v760_v51  ;;  %v845_v56 = vperm.slane %v831_v58, 0  ;;  %v881_v51 = vrot.slane %v2067_v9, 7 }
 0x18c   : > { %1197 = vrsqrt.f32 %v748_v57  ;;  %v765_v12 = vsel %vm764_vm15, %v1196_v44, %v761_v4  ;;  %vm773_vm0 = vweird.f32 %v748_v57  ;;  %v818_v44 = vmul.f32 %v817_v27, %v790_v63 }
 0x18d   : > { %v783_v23 = vmul.f32 %v765_v12, %v748_v57  ;;  %v766_v19 = vmul.f32 %v765_v12, %v755_v6 }
 0x18f   : > { %v784_v8 = vmul.f32 %v783_v23, %v780_v36  ;;  %v851_v23 = vperm.slane %v843_v46, 0  ;;  %v2232_v46 = vld [vmem:[#allocation16_spill] sm:$0xff] }
 0x191   : > { %v786_v11 = vadd.f32 %v785_v13, %v784_v8 }
 0x192   : > { %v1198_v20 = vpop.eup %1197 }
 0x193   : > { %v768_v53 = vmul.f32 %v1198_v20, %v748_v57  ;;  %vm774_vm1 = vweird.f32 %v1198_v20  ;;  %v788_v7 = vmul.f32 %v1291_v41, %v786_v11  ;;  %v890_v11 = vperm.slane %v881_v51, 0 }
 0x194   : > { %vm775_vm2 = vmor %vm773_vm0, %vm774_vm1 }
 0x195   : > { %v769_v26 = vmul.f32 %v1198_v20, %v768_v53 }
 0x197   : > { %v770_v16 = vmul.f32 0.5, %v769_v26  ;;  %v884_v26 = vperm.slane %v869_v18, 0 }
 0x199   : > { %v771_v54 = vsub.f32 1.5, %v770_v16 }
 0x19b   : > { %v772_v60 = vmul.f32 %v1198_v20, %v771_v54 }
 0x19d   : > { %v776_v40 = vsel %vm775_vm2, %v1198_v20, %v772_v60  ;;  %v835_v20 = vrot.slane %v1291_v41, 3 }
 0x19e   : > { %v777_v37 = vmul.f32 %v776_v40, %v748_v57  ;;  %v778_v30 = vmul.f32 %v776_v40, %v776_v40  ;;  %v800_v34 = vmul.f32 %v776_v40, %v765_v12  ;;  %v808_v62 = vmul.f32 %v776_v40, %v766_v19 }
 0x19f   : > { %v833_v57 = vrot.slane %v1291_v41, 2 }
 0x1a0   : > { %v779_v15 = vmul.f32 %v778_v30, %v766_v19  ;;  %v804_v17 = vmul.f32 %v777_v37, %v765_v12  ;;  %v809_v31 = vmul.f32 %v808_v62, %v780_v36  ;;  %v801_v3 = vmul.f32 %v800_v34, %v780_v36 }
 0x1a1   : > { %v837_v37 = vrot.slane %v1291_v41, 4  ;;  %v873_v30 = vrot.slane %v2067_v9, 3 }
 0x1a2   : > { %v781_v1 = vmul.f32 %v780_v36, %v779_v15  ;;  %v802_v22 = vmul.f32 %v779_v15, %v776_v40  ;;  %v805_v28 = vmul.f32 %v804_v17, %v765_v12  ;;  %v819_v33 = vmul.f32 %v804_v17, %v780_v36  ;;  %v2231_v15 = vld [vmem:[#allocation9_spill] sm:$0xff] }
 0x1a3   : > { %v2085_v14 = vadd.f32 2.0, %v809_v31  ;;  %v814_v61 = vmul.f32 %v1291_v41, %v801_v3  ;;  %v811_v39 = vmul.f32 %v801_v3, %v2067_v9  ;;  %v848_v58 = vperm.slane %v837_v37, 0 }
 0x1a4   : > { %v782_v43 = vadd.f32 2.0, %v781_v1  ;;  %v803_v10 = vmul.f32 %v802_v22, %v780_v36  ;;  %v806_v6 = vmul.f32 %v805_v28, %v765_v12  ;;  %v820_v48 = vadd.f32 %v819_v33, %v785_v13 }
 0x1a5   : > { %v822_v63 = vmul.f32 %v2085_v14, %v2010_v29  ;;  %v829_v53 = vmul.f32 %v2085_v14, %v2024_v45  ;;  %v846_v13 = vperm.slane %v833_v57, 0  ;;  %v823_v54 = vmul.f32 %v2085_v14, %v2012_v59 }
 0x1a6   : > { %v787_v35 = vmul.f32 %v782_v43, %v2067_v9  ;;  %v807_v55 = vmul.f32 %v806_v6, %v780_v36  ;;  %v815_v50 = vmul.f32 %v803_v10, %v2067_v9  ;;  %v2106_v36 = vadd.f32 %v820_v48, %v818_v44  ;;  %v2233_v48 = vld [vmem:[#allocation10_spill] sm:$0xff] }
 0x1a7   : > { %v824_v31 = vmul.f32 %v2085_v14, %v2014_v52  ;;  %v839_v28 = vrot.slane %v1291_v41, 5  ;;  %v875_v43 = vrot.slane %v2067_v9, 4  ;;  %v886_v10 = vperm.slane %v873_v30, 0 }
 0x1a8   : > { %v789_v49 = vadd.f32 %v788_v7, %v787_v35  ;;  %v812_v2 = vmul.f32 %v1291_v41, %v807_v55  ;;  %v2094_v0 = vsub.f32 %v814_v61, %v815_v50  ;;  %v907_v17 = vmul.f32 %v2231_v15, %v2106_v36 }
 0x1a9   : > { %v825_v33 = vmul.f32 %v2085_v14, %v2016_v25  ;;  %v914_v35 = vmul.f32 %v2232_v46, %v2106_v36  ;;  %v877_v44 = vrot.slane %v2067_v9, 5  ;;  %v826_v18 = vmul.f32 %v2085_v14, %v2018_v32 }
 0x1aa   : > { %v2099_v4 = vsub.f32 %v789_v49, %v791_v38  ;;  %v2101_v12 = vsub.f32 %v811_v39, %v812_v2  ;;  %v871_v38 = vrot.slane %v2067_v9, 2  ;;  %v891_v16 = vmul.f32 %v883_v5, %v2094_v0 }
 0x1ab   : > { %v898_v3 = vmul.f32 %v890_v11, %v2094_v0  ;;  %v892_v27 = vmul.f32 %v884_v26, %v2094_v0  ;;  %v841_v39 = vrot.slane %v1291_v41, 6  ;;  %v849_v49 = vperm.slane %v839_v28, 0  ;;  %v2234_v26 = vld [vmem:[#allocation11_spill] sm:$0xff] }
 0x1ac   : > { %v852_v8 = vmul.f32 %v2101_v12, %v719_v42  ;;  %v853_v60 = vmul.f32 %v845_v56, %v2101_v12  ;;  %v859_v19 = vmul.f32 %v851_v23, %v2101_v12  ;;  %v847_v42 = vperm.slane %v835_v20, 0 }
 0x1ad   : > { %v885_v62 = vperm.slane %v871_v38, 0  ;;  %v854_v1 = vmul.f32 %v846_v13, %v2101_v12  ;;  %v908_v56 = vmul.f32 %v2233_v48, %v2106_v36  ;;  %v856_v51 = vmul.f32 %v848_v58, %v2101_v12 }
 0x1ae   : > { %v860_v40 = vadd.f32 %v852_v8, %v822_v63  ;;  %v867_v34 = vadd.f32 %v859_v19, %v829_v53  ;;  %v861_v7 = vadd.f32 %v853_v60, %v823_v54  ;;  %v855_v61 = vmul.f32 %v847_v42, %v2101_v12 }
 0x1af   : > { %v862_v50 = vadd.f32 %v854_v1, %v824_v31  ;;  %v893_v5 = vmul.f32 %v885_v62, %v2094_v0  ;;  %v887_v63 = vperm.slane %v875_v43, 0  ;;  %v879_v20 = vrot.slane %v2067_v9, 6  ;;  %v2235_v9 = vld [vmem:[#allocation12_spill] sm:$0xff]  ;;  %v2236_v43 = vld [vmem:[#allocation13_spill] sm:$0xff] }
 0x1b0   : > { %v899_v22 = vadd.f32 %v891_v16, %v860_v40  ;;  %v906_v6 = vadd.f32 %v898_v3, %v867_v34  ;;  %v900_v2 = vadd.f32 %v892_v27, %v861_v7  ;;  %v863_v23 = vadd.f32 %v855_v61, %v825_v33 }
 0x1b1   : > { %v894_v53 = vmul.f32 %v886_v10, %v2094_v0  ;;  %v850_v8 = vperm.slane %v841_v39, 0  ;;  %v888_v38 = vperm.slane %v877_v44, 0  ;;  %v901_v13 = vadd.f32 %v893_v5, %v862_v50 }
 0x1b2   : > { %v915_v55 = vadd.f32 %v907_v17, %v899_v22  ;;  %v2140_v57 = vadd.f32 %v914_v35, %v906_v6  ;;  %v909_v11 = vmul.f32 %v2234_v26, %v2106_v36  ;;  %v827_v16 = vmul.f32 %v2085_v14, %v2020_v47 }
 0x1b3   : > { %v857_v54 = vmul.f32 %v849_v49, %v2101_v12  ;;  %v916_v60 = vadd.f32 %v908_v56, %v900_v2  ;;  %v864_v19 = vadd.f32 %v856_v51, %v826_v18  ;;  %v895_v40 = vmul.f32 %v887_v63, %v2094_v0  ;;  %v2238_v51 = vld [vmem:[#allocation15_spill] sm:$0xff] }
 0x1b4   : > { %1199 = vrcp.f32 %v915_v55  ;;  %v889_v37 = vperm.slane %v879_v20, 0  ;;  %v902_v30 = vadd.f32 %v894_v53, %v863_v23  ;;  %v910_v42 = vmul.f32 %v2235_v9, %v2106_v36 }
 0x1b5   : > { %v924_v34 = vsub.f32 %v915_v55, %v2231_v15  ;;  %v828_v17 = vmul.f32 %v2085_v14, %v2022_v21  ;;  %v858_v31 = vmul.f32 %v850_v8, %v2101_v12  ;;  %v896_v1 = vmul.f32 %v888_v38, %v2094_v0  ;;  %v2237_v55 = vld [vmem:[#allocation14_spill] sm:$0xff] }
 0x1b6   : > { %v917_v3 = vadd.f32 %v909_v11, %v901_v13  ;;  %v865_v22 = vadd.f32 %v857_v54, %v827_v16  ;;  %v927_v7 = vperm.slane %v2099_v4, 0  ;;  %v930_v27 = vperm.slane %v916_v60, 0 }
 0x1b7   : > { %v903_v58 = vadd.f32 %v895_v40, %v864_v19  ;;  %v911_v10 = vmul.f32 %v2236_v43, %v2106_v36  ;;  %v918_v6 = vadd.f32 %v910_v42, %v902_v30  ;;  %v866_v61 = vadd.f32 %v858_v31, %v828_v17 }
 0x1b8   : > { %v897_v14 = vmul.f32 %v889_v37, %v2094_v0  ;;  %v931_v35 = vperm.slane %v917_v3, 0  ;;  %v904_v12 = vadd.f32 %v896_v1, %v865_v22  ;;  %v912_v39 = vmul.f32 %v2237_v55, %v2106_v36 }
 0x1b9   : > { %v919_v5 = vadd.f32 %v911_v10, %v903_v58  ;;  %v932_v2 = vperm.slane %v918_v6, 0  ;;  %v913_v63 = vmul.f32 %v2238_v51, %v2106_v36  ;;  %v936_v53 = vperm.slane %v2140_v57, 0 }
 0x1ba   : > { %v1200_v62 = vpop.eup %1199  ;;  %v905_v18 = vadd.f32 %v897_v14, %v866_v61  ;;  %v920_v20 = vadd.f32 %v912_v39, %v904_v12 }
 0x1bb   : > { %v925_v28 = vperm.slane %v1200_v62, 0  ;;  %v933_v0 = vperm.slane %v919_v5, 0 }
 0x1bc   : > { %v921_v38 = vadd.f32 %v913_v63, %v905_v18  ;;  %v934_v11 = vperm.slane %v920_v20, 0 }
 0x1bd   : > { %v926_v33 = vmul.f32 %v925_v28, %v924_v34 }
 0x1be   : > { %v935_v37 = vperm.slane %v921_v38, 0 }
 0x1bf   : > { %v928_v50 = vmul.f32 %v927_v7, %v926_v33  ;;  %v937_v44 = vmul.f32 %v930_v27, %v926_v33  ;;  %v938_v23 = vmul.f32 %v931_v35, %v926_v33  ;;  %v939_v8 = vmul.f32 %v932_v2, %v926_v33 }
 0x1c0   : > { %v940_v16 = vmul.f32 %v933_v0, %v926_v33  ;;  %v943_v40 = vmul.f32 %v936_v53, %v926_v33  ;;  %v941_v36 = vmul.f32 %v934_v11, %v926_v33  ;;  %v942_v1 = vmul.f32 %v935_v37, %v926_v33 }
 0x1c1   : > { %v929_v49 = vsub.f32 %v2099_v4, %v928_v50  ;;  %v944_v56 = vsub.f32 %v916_v60, %v937_v44  ;;  %v945_v13 = vsub.f32 %v917_v3, %v938_v23  ;;  %v946_v60 = vsub.f32 %v918_v6, %v939_v8 }
 0x1c2   : > { %v947_v34 = vsub.f32 %v919_v5, %v940_v16  ;;  %v950_v17 = vsub.f32 %v2140_v57, %v943_v40  ;;  %v948_v28 = vsub.f32 %v920_v20, %v941_v36  ;;  %v949_v61 = vsub.f32 %v921_v38, %v942_v1 }
 0x1c3   : > { %1201 = vrcp.f32 %v944_v56  ;;  %v952_v54 = vsub.f32 %v944_v56, %v2233_v48  ;;  %v958_v42 = vperm.slane %v945_v13, 1  ;;  %v959_v31 = vperm.slane %v946_v60, 1 }
 0x1c4   : > { %v955_v3 = vperm.slane %v929_v49, 1  ;;  %v960_v7 = vperm.slane %v947_v34, 1  ;;  %v963_v58 = vperm.slane %v950_v17, 1  ;;  %v961_v6 = vperm.slane %v948_v28, 1 }
 0x1c5   : > { %v962_v50 = vperm.slane %v949_v61, 1 }
 0x1c9   : > { %v1202_v19 = vpop.eup %1201 }
 0x1ca   : > { %v953_v30 = vperm.slane %v1202_v19, 1 }
 0x1cc   : > { %v954_v62 = vmul.f32 %v953_v30, %v952_v54 }
 0x1ce   : > { %v964_v22 = vmul.f32 %v958_v42, %v954_v62  ;;  %v965_v10 = vmul.f32 %v959_v31, %v954_v62  ;;  %v956_v14 = vmul.f32 %v955_v3, %v954_v62  ;;  %v966_v35 = vmul.f32 %v960_v7, %v954_v62 }
 0x1cf   : > { %v969_v12 = vmul.f32 %v963_v58, %v954_v62  ;;  %v967_v44 = vmul.f32 %v961_v6, %v954_v62  ;;  %v968_v23 = vmul.f32 %v962_v50, %v954_v62 }
 0x1d0   : > { %v970_v27 = vsub.f32 %v945_v13, %v964_v22  ;;  %v971_v39 = vsub.f32 %v946_v60, %v965_v10  ;;  %v957_v33 = vsub.f32 %v929_v49, %v956_v14  ;;  %v972_v2 = vsub.f32 %v947_v34, %v966_v35 }
 0x1d1   : > { %v975_v56 = vsub.f32 %v950_v17, %v969_v12  ;;  %v973_v20 = vsub.f32 %v948_v28, %v967_v44  ;;  %v974_v11 = vsub.f32 %v949_v61, %v968_v23 }
 0x1d2   : > { %1203 = vrcp.f32 %v970_v27  ;;  %v977_v57 = vsub.f32 %v970_v27, %v2234_v26  ;;  %v983_v63 = vperm.slane %v971_v39, 2  ;;  %v980_v53 = vperm.slane %v957_v33, 2 }
 0x1d3   : > { %v984_v8 = vperm.slane %v972_v2, 2  ;;  %v987_v38 = vperm.slane %v975_v56, 2  ;;  %v985_v16 = vperm.slane %v973_v20, 2  ;;  %v986_v37 = vperm.slane %v974_v11, 2 }
 0x1d8   : > { %v1204_v5 = vpop.eup %1203 }
 0x1d9   : > { %v978_v18 = vperm.slane %v1204_v5, 2 }
 0x1db   : > { %v979_v0 = vmul.f32 %v978_v18, %v977_v57 }
 0x1dd   : > { %v988_v13 = vmul.f32 %v983_v63, %v979_v0  ;;  %v981_v19 = vmul.f32 %v980_v53, %v979_v0  ;;  %v989_v40 = vmul.f32 %v984_v8, %v979_v0  ;;  %v992_v60 = vmul.f32 %v987_v38, %v979_v0 }
 0x1de   : > { %v990_v49 = vmul.f32 %v985_v16, %v979_v0  ;;  %v991_v34 = vmul.f32 %v986_v37, %v979_v0 }
 0x1df   : > { %v993_v54 = vsub.f32 %v971_v39, %v988_v13  ;;  %v982_v30 = vsub.f32 %v957_v33, %v981_v19  ;;  %v994_v42 = vsub.f32 %v972_v2, %v989_v40  ;;  %v997_v36 = vsub.f32 %v975_v56, %v992_v60 }
 0x1e0   : > { %v995_v31 = vsub.f32 %v973_v20, %v990_v49  ;;  %v996_v7 = vsub.f32 %v974_v11, %v991_v34 }
 0x1e1   : > { %1205 = vrcp.f32 %v993_v54  ;;  %v999_v62 = vsub.f32 %v993_v54, %v2235_v9  ;;  %v1002_v22 = vperm.slane %v982_v30, 3  ;;  %v1005_v28 = vperm.slane %v994_v42, 3 }
 0x1e2   : > { %v1008_v3 = vperm.slane %v997_v36, 3  ;;  %v1006_v58 = vperm.slane %v995_v31, 3  ;;  %v1007_v35 = vperm.slane %v996_v7, 3 }
 0x1e7   : > { %v1206_v17 = vpop.eup %1205 }
 0x1e8   : > { %v1000_v1 = vperm.slane %v1206_v17, 3 }
 0x1ea   : > { %v1001_v27 = vmul.f32 %v1000_v1, %v999_v62 }
 0x1ec   : > { %v1003_v10 = vmul.f32 %v1002_v22, %v1001_v27  ;;  %v1009_v61 = vmul.f32 %v1005_v28, %v1001_v27  ;;  %v1012_v6 = vmul.f32 %v1008_v3, %v1001_v27  ;;  %v1010_v39 = vmul.f32 %v1006_v58, %v1001_v27 }
 0x1ed   : > { %v1011_v44 = vmul.f32 %v1007_v35, %v1001_v27 }
 0x1ee   : > { %v1004_v14 = vsub.f32 %v982_v30, %v1003_v10  ;;  %v1013_v12 = vsub.f32 %v994_v42, %v1009_v61  ;;  %v1016_v50 = vsub.f32 %v997_v36, %v1012_v6  ;;  %v1014_v57 = vsub.f32 %v995_v31, %v1010_v39 }
 0x1ef   : > { %v1015_v2 = vsub.f32 %v996_v7, %v1011_v44 }
 0x1f0   : > { %1207 = vrcp.f32 %v1013_v12  ;;  %v1018_v5 = vsub.f32 %v1013_v12, %v2236_v43  ;;  %v1021_v18 = vperm.slane %v1004_v14, 4  ;;  %v1024_v63 = vperm.slane %v1014_v57, 4 }
 0x1f1   : > { %v1026_v23 = vperm.slane %v1016_v50, 4  ;;  %v1025_v0 = vperm.slane %v1015_v2, 4  ;;  %v793_v12 = vmul.f32 %v2099_v4, %v2099_v4 }
 0x1f3   : > { %v794_v39 = vrot.slane %v793_v12, 4 }
 0x1f6   : > { %v1208_v33 = vpop.eup %1207 }
 0x1f7   : > { %v1019_v56 = vperm.slane %v1208_v33, 4 }
 0x1f9   : > { %v1020_v20 = vmul.f32 %v1019_v56, %v1018_v5 }
 0x1fb   : > { %v1022_v53 = vmul.f32 %v1021_v18, %v1020_v20  ;;  %v1027_v8 = vmul.f32 %v1024_v63, %v1020_v20  ;;  %v1029_v38 = vmul.f32 %v1026_v23, %v1020_v20  ;;  %v1028_v54 = vmul.f32 %v1025_v0, %v1020_v20 }
 0x1fd   : > { %v1023_v13 = vsub.f32 %v1004_v14, %v1022_v53  ;;  %v1030_v11 = vsub.f32 %v1014_v57, %v1027_v8  ;;  %v1032_v16 = vsub.f32 %v1016_v50, %v1029_v38  ;;  %v1031_v19 = vsub.f32 %v1015_v2, %v1028_v54 }
 0x1fe   : > { %v795_v57 = vadd.f32 %v794_v39, %v793_v12  ;;  %v1308_v53 = vmov 0.0  }
 0x1ff   : > { %1209 = vrcp.f32 %v1030_v11  ;;  %v1034_v40 = vsub.f32 %v1030_v11, %v2237_v55  ;;  %v1037_v49 = vperm.slane %v1023_v13, 5  ;;  %v1040_v30 = vperm.slane %v1031_v19, 5 }
 0x200   : > { %v1041_v42 = vperm.slane %v1032_v16, 5  ;;  %v796_v56 = vrot.slane %v795_v57, 2 }
 0x202   : > { %v797_v23 = vadd.f32 %v796_v56, %v795_v57 }
 0x204   : > { %v798_v0 = vrot.slane %v797_v23, 1 }
 0x205   : > { %v1210_v60 = vpop.eup %1209 }
 0x206   : > { %v1035_v37 = vperm.slane %v1210_v60, 5  ;;  %v799_v11 = vadd.f32 %v798_v0, %v797_v23 }
 0x208   : > { %v1036_v36 = vmul.f32 %v1035_v37, %v1034_v40  ;;  %vm1075_vm5 = vcmp.gt.f32.partialorder %v799_v11, 1e-06 }
 0x209   : > { %vm1076_vm6 = vmand %vm704_vm3, %vm1075_vm5 }
 0x20a   : > { %v1038_v34 = vmul.f32 %v1037_v49, %v1036_v36  ;;  %v1042_v62 = vmul.f32 %v1040_v30, %v1036_v36  ;;  %v1043_v17 = vmul.f32 %v1041_v42, %v1036_v36 }
 0x20c   : > { %v1039_v31 = vsub.f32 %v1023_v13, %v1038_v34  ;;  %v1044_v1 = vsub.f32 %v1031_v19, %v1042_v62  ;;  %v1045_v22 = vsub.f32 %v1032_v16, %v1043_v17 }
 0x20e   : > { %1211 = vrcp.f32 %v1044_v1  ;;  %v1047_v28 = vsub.f32 %v1044_v1, %v2238_v51  ;;  %v1050_v27 = vperm.slane %v1039_v31, 6  ;;  %v1053_v58 = vperm.slane %v1045_v22, 6 }
 0x214   : > { %v1212_v3 = vpop.eup %1211 }
 0x215   : > { %v1048_v7 = vperm.slane %v1212_v3, 6 }
 0x217   : > { %v1049_v10 = vmul.f32 %v1048_v7, %v1047_v28 }
 0x219   : > { %v1051_v61 = vmul.f32 %v1050_v27, %v1049_v10  ;;  %v1054_v6 = vmul.f32 %v1053_v58, %v1049_v10 }
 0x21b   : > { %v1052_v14 = vsub.f32 %v1039_v31, %v1051_v61  ;;  %v1055_v35 = vsub.f32 %v1045_v22, %v1054_v6 }
 0x21d   : > { %1213 = vrcp.f32 %v1055_v35  ;;  %v1057_v50 = vsub.f32 %v1055_v35, %v2232_v46  ;;  %v1060_v33 = vperm.slane %v1052_v14, 7 }
 0x223   : > { %v1214_v44 = vpop.eup %1213 }
 0x224   : > { %v1058_v5 = vperm.slane %v1214_v44, 7 }
 0x226   : > { %v1059_v2 = vmul.f32 %v1058_v5, %v1057_v50 }
 0x228   : > { %v1061_v18 = vmul.f32 %v1060_v33, %v1059_v2 }
 0x22a   : > { %v1062_v63 = vsub.f32 %v1052_v14, %v1061_v18 }
 0x22c   : > { %v1063_v20 = vsub.f32 %v1291_v41, %v1062_v63 }
 0x22e   : > { %v1066_v4 = vsel %vm704_vm3, %v1063_v20, %v1291_v41  }
 0x22f   : > { %vm1067_vm4 = vcmp.ne.f32.partialorder %v1066_v4, %v1066_v4 }
 0x230   : > { %v1068_v8 = vsel %vm1067_vm4, 1.0, %v1308_v53 }
 0x231   : > { %v1069_v38 = vrot.slane %v1068_v8, 4 }
 0x233   : > { %v1070_v13 = vmax.f32 %v1068_v8, %v1069_v38 }
 0x235   : > { %v1071_v16 = vrot.slane %v1070_v13, 2 }
 0x237   : > { %v1072_v54 = vmax.f32 %v1070_v13, %v1071_v16 }
 0x239   : > { %v1073_v19 = vrot.slane %v1072_v54, 1 }
 0x23b   : > { %v1074_v40 = vmax.f32 %v1072_v54, %v1073_v19 }
 0x23d   : > { %vm1077_vm7 = vcmp.lt.f32.partialorder %v1074_v40, 0.5 }
 0x23e   : > { %vm1078_vm8 = vmand %vm1076_vm6, %vm1077_vm7 }
 0x23f   : > { %v1079_v24 = vsel %vm1078_vm8, 1.0, %v1308_v53  }
 0x240   : > { %696 = vmax.xlane.f32.xlu0 %v1079_v24 }
 0x2b3   : > { %v697_v41 = vpop.xlane.xlu0 %696 }
 0x2b4   : > { %1147 = vpush %v697_v41  ;;  %v2239_v41 = vmov %v1066_v4 }
 0x2e5   : > { %s1148_s10 = spop %1147 }
 0x2e6   : > { %p699_p2 = scmp.gt.f32.partialorder %s1148_s10, 0.0 }
 0x2e8   : > { %p700_p3 = pnand %p699_p2, %p695_p1 }
 0x2e9   :  { %v2241_v51 = vmov (%p700_p3), %v1066_v4 }
 0x2ea   :  { %703 = sbr.rel (!%p700_p3) target bundleno = 364 (0x16c), region = 43 }
 0x2ef PF:  { %v1081_v60 = vrot.slane %v1299_v51, 4  ;;  %s1309_s0 = smov [#allocation6]   ;;  %s1110_s14 = sshll.u32 %s2207_s3, 4  ;;  %v1299_v51 = vphi %v2229_v51, %v2241_v51   ;;  %s1111_s14 = int_to_ptr.hbm [resolvable:$true] %s1110_s14 }
 0x2f0   :  { %s1108_s11 = sshll.u32 %s1309_s0, 4  ;;  %s1109_s11 = int_to_ptr.vmem [resolvable:$true] %s1108_s11 }
 0x2f1   :  { %v1082_v37 = vadd.f32 %v1299_v51, %v1081_v60 }
 0x2f3   :  { %v1083_v49 = vrot.slane %v1082_v37, 2 }
 0x2f5   :  { %v1084_v30 = vadd.f32 %v1083_v49, %v1082_v37 }
 0x2f7   :  { %v1085_v42 = vrot.slane %v1084_v30, 1 }
 0x2f9   :  { %v1086_v36 = vadd.f32 %v1085_v42, %v1084_v30 }
 0x2fb   :  { %1215 = vrcp.f32 %v1086_v36  ;;  %v1098_v17 = vand.u32 2147483648, %v1086_v36  ;;  %vm1092_vm9 = vweird.f32 %v1086_v36  ;;  %v1096_v1 = vand.u32 2147483647, %v1086_v36 }
 0x2fd   :  { %v1099_v59 = vor.u32 1.1754944e-38, %v1098_v17  ;;  %vm1097_vm12 = vcmp.eq.f32.partialorder %v1096_v1, 8.507059e+37 }
 0x301   :  { %v1216_v34 = vpop.eup %1215 }
 0x302   :  { %v1088_v62 = vmul.f32 %v1216_v34, %v1086_v36  ;;  %vm1093_vm10 = vweird.f32 %v1216_v34 }
 0x303   :  { %vm1094_vm11 = vmor %vm1092_vm9, %vm1093_vm10 }
 0x304   :  { %v1089_v31 = vsub.f32 1.0, %v1088_v62 }
 0x306   :  { %v1090_v29 = vmul.f32 %v1216_v34, %v1089_v31 }
 0x308   :  { %v1091_v52 = vadd.f32 %v1216_v34, %v1090_v29 }
 0x30a   :  { %v1095_v25 = vsel %vm1094_vm11, %v1216_v34, %v1091_v52 }
 0x30b   :  { %v1100_v32 = vsel %vm1097_vm12, %v1099_v59, %v1095_v25 }
 0x30c   :  { %v1101_v47 = vmul.f32 %v1299_v51, %v1100_v32 }
 0x30e   :  { %1102 = vst [vmem:[#allocation6] sm:$0xff] %v1101_v47 }
 0x30f   :  { %1113 = dma.vmem_to_hbm [thread:$0]  %s1109_s11, 128, %s1111_s14, [#allocation5]  }
 0x310   :  { %1283 = dma.done.wait [#allocation5], 128  }
 0x311   :  { %1284 = vsyncadd [#allocation5], 4294967168 }
 0x312   :  { %1118 = vsyncpa [#allocation4], 1 }
 0x313   :  { %1119 = vsyncpa [#allocation5], 1 }

</bundles_post_ra>
